<compile_context>
chip_gen: v6e
topology: v6e:2x2x1
jax: 0.10.0
libtpu: 0.0.40
codegen_flags: <defaults>
</compile_context>

<pallas_src>
import functools

import jax
import jax.numpy as jnp
from jax import lax
from jax.experimental import pallas as pl
from jax.experimental.pallas import tpu as pltpu

DIM = 64  # channel dim hard-coded in QK_PAM


def _round_up(x, m):
    return (x + m - 1) // m * m


# ----------------------------------------------------------------------------
# Kernel: fused (1x1-conv query projection) + QK^T + row softmax.
# Block shapes per grid step (b, qi):
#   d_ref   : [tq, 64]   query pixels of this tile (pixel-major), f32
#   k_ref   : [64, HW]   all projected keys (== K^T) of this batch
#   wqt_ref : [64, 64]   Wq^T (in, out), f32
#   bq_ref  : [1, 64]    query bias
#   o_ref   : [tq, HW]   attention rows (lane-dense output block)
# ----------------------------------------------------------------------------
def qk_pam_kernel(d_ref, k_ref, wqt_ref, bq_ref, o_ref):
    # Query projection (1x1 conv on D): [tq, 64] @ [64, 64] + bias.
    q = jnp.dot(d_ref[...], wqt_ref[...],
                preferred_element_type=jnp.float32) + bq_ref[...]
    # Energy: [tq, 64] @ [64, HW] -> [tq, HW].  K is already projected
    # (hoisted to the wrapper, once per batch) and pre-cast to the energy
    # dtype, so the only in-kernel cast is the tiny [tq, 64] q tile.
    s = jnp.dot(q.astype(k_ref.dtype), k_ref[...],
                preferred_element_type=jnp.float32)
    # Row softmax over the key axis (matches torch.Softmax(dim=-1)).
    # Elementwise tail (sub, exp, scale, cast) is left for Mosaic to fuse.
    m = jnp.max(s, axis=-1, keepdims=True)
    e = jnp.exp(s - m)
    denom = jnp.sum(e, axis=-1, keepdims=True)
    o_ref[...] = (e * pl.reciprocal(denom, approx=False)).astype(o_ref.dtype)


def _vmem_budgets():
    """Returns (tile_budget_bytes, vmem_limit_bytes), derived per generation."""
    try:
        phys = pltpu.get_tpu_info().vmem_capacity_bytes
    except Exception:
        phys = 64 * 1024 * 1024          # conservative (v7x-sized) fallback
    if phys >= 96 * 1024 * 1024:         # v5e / v6e: 128 MiB physical VMEM
        return 52 * 1024 * 1024, 64 * 1024 * 1024
    # v7x: 64 MiB physical per TensorCore -- leave headroom.
    return 34 * 1024 * 1024, 44 * 1024 * 1024


def _pick_q_tile(hw, out_bytes, k_bytes, budget):
    """Largest sublane-aligned query tile whose estimated working set fits:
    double-buffered output block + f32 energy/exp temporaries + double-
    buffered K block + double-buffered D tile + weights."""
    full = _round_up(hw, 8)
    fixed = 2 * DIM * hw * k_bytes + 4 * DIM * DIM * 4   # K block (x2) + weights
    per_q_row = hw * (2 * out_bytes + 12) + 2 * DIM * 4   # out(x2) + temps + D(x2)
    for t in (1024, 512, 256, 128, 64, 32, 16, 8):
        if t <= full and fixed + t * per_q_row <= budget:
            return t
    # TODO(synk): key-tiled online-softmax fallback for enormous HW.
    return min(full, 8)


def qk_pam_pallas(R, D, wq, bq, wk, bk=None, *, tq=None,
                  energy_dtype=jnp.float32, out_dtype=jnp.float32):
    """Fused QK_PAM forward.

    R, D   : [B, 64, H, W] (NCHW)
    wq, wk : [64, 64] 1x1-conv weights (out_ch, in_ch)
    bq, bk : [64] biases.  bk is mathematically redundant (the row softmax is
             invariant to the per-row constant q . bk) and is dropped.
    Returns attention [B, H*W, H*W] = softmax(DQ1 @ RK1, axis=-1).
    """
    del bk  # softmax over keys is invariant to the key bias
    B, C, H, W = R.shape
    assert D.shape == (B, C, H, W) and C == DIM
    HW = H * W

    # --- XLA-side prep: all O(B*HW*64), negligible vs. the [HW,HW] output ---
    # D goes pixel-major so the in-kernel query projection needs no transpose.
    d_hwc = D.reshape(B, C, HW).transpose(0, 2, 1)                  # [B, HW, 64]
    # Key projection hoisted out of the kernel (once per batch instead of once
    # per q tile).  Its output is channel-major, i.e. already K^T.
    k_all = jnp.einsum('oc,bcp->bop', wk, R.reshape(B, C, HW),
                       precision=lax.Precision.HIGHEST).astype(energy_dtype)
    wq_t = wq.T.astype(jnp.float32)                                 # [in, out]
    bq_row = bq.reshape(1, DIM).astype(jnp.float32)

    out_bytes = jnp.dtype(out_dtype).itemsize
    k_bytes = jnp.dtype(energy_dtype).itemsize
    tile_budget, vmem_limit = _vmem_budgets()
    if tq is None:
        tq = _pick_q_tile(HW, out_bytes, k_bytes, tile_budget)
    tq = min(_round_up(tq, 8), _round_up(HW, 8))
    n_q = pl.cdiv(HW, tq)                 # partial last tile is masked by Pallas

    out = pl.pallas_call(
        qk_pam_kernel,
        out_shape=jax.ShapeDtypeStruct((B, HW, HW), out_dtype),
        grid_spec=pltpu.PrefetchScalarGridSpec(
            num_scalar_prefetch=0,
            grid=(B, n_q),
            in_specs=[
                # D: one query tile per step.
                pl.BlockSpec((None, tq, DIM), lambda b, qi: (b, qi, 0)),
                # K^T: all keys of this batch; block index constant across the
                # inner q axis, so it is DMA'd once per batch.
                pl.BlockSpec((None, DIM, HW), lambda b, qi: (b, 0, 0)),
                pl.BlockSpec((DIM, DIM), lambda b, qi: (0, 0)),   # Wq^T
                pl.BlockSpec((1, DIM), lambda b, qi: (0, 0)),     # bq
            ],
            out_specs=pl.BlockSpec((None, tq, HW), lambda b, qi: (b, qi, 0)),
        ),
        compiler_params=pltpu.CompilerParams(
            dimension_semantics=("parallel", "parallel"),
            vmem_limit_bytes=vmem_limit),
    )(d_hwc, k_all, wq_t, bq_row)
    return out


# ----------------------------------------------------------------------------
# Pure-JAX reference (mirrors the PyTorch module, f32, including bk).
# ----------------------------------------------------------------------------
def qk_pam_reference(R, D, wq, bq, wk, bk):
    B, C, H, W = R.shape
    HW = H * W
    hp = lax.Precision.HIGHEST
    q = jnp.einsum('oc,bchw->bohw', wq, D, precision=hp) + bq[None, :, None, None]
    k = jnp.einsum('oc,bchw->bohw', wk, R, precision=hp) + bk[None, :, None, None]
    q = q.reshape(B, C, HW).transpose(0, 2, 1)            # [B, HW, C]
    k = k.reshape(B, C, HW)                               # [B, C, HW]
    energy = jnp.einsum('bpc,bck->bpk', q, k, precision=hp)
    return jax.nn.softmax(energy, axis=-1)


if __name__ == "__main__":
    key = jax.random.PRNGKey(0)
    kR, kD, kwq, kbq, kwk, kbk = jax.random.split(key, 6)

    B, H, W = 2, 16, 16
    R = jax.random.normal(kR, (B, DIM, H, W), jnp.float32)
    D = jax.random.normal(kD, (B, DIM, H, W), jnp.float32)

    # Synthetic 1x1-conv params (kaiming-normal-like weights, small biases).
    std = (2.0 / DIM) ** 0.5
    wq = jax.random.normal(kwq, (DIM, DIM), jnp.float32) * std
    wk = jax.random.normal(kwk, (DIM, DIM), jnp.float32) * std
    bq = jax.random.normal(kbq, (DIM,), jnp.float32) * 0.1
    bk = jax.random.normal(kbk, (DIM,), jnp.float32) * 0.1

    ref = qk_pam_reference(R, D, wq, bq, wk, bk)

    # --- f32 default path: tight check against the pure-JAX reference -------
    attn = jax.block_until_ready(jax.jit(qk_pam_pallas)(R, D, wq, bq, wk, bk))
    assert attn.shape == (B, H * W, H * W)
    row_sums = jnp.sum(attn, axis=-1)
    assert bool(jnp.all(jnp.abs(row_sums - 1.0) < 1e-3))
    max_err = float(jnp.max(jnp.abs(attn - ref)))
    assert max_err < 1e-3, f"f32 path max abs err {max_err}"

    # --- bf16 fast path (bf16 energy matmul + bf16 output): sanity bounds ---
    fast = jax.jit(functools.partial(
        qk_pam_pallas, energy_dtype=jnp.bfloat16, out_dtype=jnp.bfloat16))
    attn_bf16 = jax.block_until_ready(fast(R, D, wq, bq, wk, bk))
    assert attn_bf16.dtype == jnp.bfloat16
    rs_bf16 = jnp.sum(attn_bf16.astype(jnp.float32), axis=-1)
    assert bool(jnp.all(jnp.abs(rs_bf16 - 1.0) < 2e-2))
    max_err_bf16 = float(jnp.max(jnp.abs(attn_bf16.astype(jnp.float32) - ref)))
    assert max_err_bf16 < 0.25, f"bf16 path max abs err {max_err_bf16}"

    # --- non-128-divisible spatial size exercises the cdiv / partial-tile path
    H2 = W2 = 12
    R2 = jax.random.normal(kR, (1, DIM, H2, W2), jnp.float32)
    D2 = jax.random.normal(kD, (1, DIM, H2, W2), jnp.float32)
    attn2 = jax.block_until_ready(jax.jit(qk_pam_pallas)(R2, D2, wq, bq, wk, bk))
    ref2 = qk_pam_reference(R2, D2, wq, bq, wk, bk)
    max_err2 = float(jnp.max(jnp.abs(attn2 - ref2)))
    assert max_err2 < 1e-3, f"partial-tile path max abs err {max_err2}"

    print("KERNEL_OK")
</pallas_src>

<mosaic_0001>
module attributes {stable_mosaic.version = 11 : i64} {
  func.func @qk_pam_kernel(%arg0: i32, %arg1: i32, %arg2: memref<1x256x64xf32, #tpu.memory_space<vmem>>, %arg3: memref<1x64x256xf32, #tpu.memory_space<vmem>>, %arg4: memref<64x64xf32, #tpu.memory_space<vmem>>, %arg5: memref<1x64xf32, #tpu.memory_space<vmem>>, %arg6: memref<1x256x256xf32, #tpu.memory_space<vmem>>) attributes {dimension_semantics = [#tpu.dimension_semantics<parallel>, #tpu.dimension_semantics<parallel>], iteration_bounds = array<i64: 2, 1>, scalar_prefetch = 0 : i64, scratch_operands = 0 : i64, tpu.core_type = #tpu.core_type<tc>, window_params = [{transform_indices = @transform_0, window_bounds = array<i64: 1, 256, 64>}, {transform_indices = @transform_1, window_bounds = array<i64: 1, 64, 256>}, {pipeline_mode = #tpu.pipeline_mode<synchronous>, transform_indices = @transform_2, window_bounds = array<i64: 64, 64>}, {pipeline_mode = #tpu.pipeline_mode<synchronous>, transform_indices = @transform_3, window_bounds = array<i64: 1, 64>}, {transform_indices = @transform_4, window_bounds = array<i64: 1, 256, 256>}]} {
    %c0 = arith.constant 0 : index
    %c0_0 = arith.constant 0 : index
    %c0_1 = arith.constant 0 : index
    %0 = vector.load %arg2[%c0, %c0_0, %c0_1] : memref<1x256x64xf32, #tpu.memory_space<vmem>>, vector<1x256x64xf32>
    %1 = vector.shape_cast %0 : vector<1x256x64xf32> to vector<256x64xf32>
    %c0_2 = arith.constant 0 : index
    %c0_3 = arith.constant 0 : index
    %2 = vector.load %arg4[%c0_2, %c0_3] : memref<64x64xf32, #tpu.memory_space<vmem>>, vector<64x64xf32>
    %cst = arith.constant dense<0.000000e+00> : vector<256x64xf32>
    %3 = tpu.matmul %1, %2, %cst {dimension_numbers = #tpu.dot_dimension_numbers<[1], [0], [0], [1], [0, 0, 1, 1], [], []>} : vector<256x64xf32>, vector<64x64xf32>, vector<256x64xf32> -> vector<256x64xf32>
    %c0_4 = arith.constant 0 : index
    %c0_5 = arith.constant 0 : index
    %4 = vector.load %arg5[%c0_4, %c0_5] : memref<1x64xf32, #tpu.memory_space<vmem>>, vector<1x64xf32>
    %5 = vector.broadcast %4 : vector<1x64xf32> to vector<256x64xf32>
    %6 = arith.addf %3, %5 : vector<256x64xf32>
    %c0_6 = arith.constant 0 : index
    %c0_7 = arith.constant 0 : index
    %c0_8 = arith.constant 0 : index
    %7 = vector.load %arg3[%c0_6, %c0_7, %c0_8] : memref<1x64x256xf32, #tpu.memory_space<vmem>>, vector<1x64x256xf32>
    %8 = vector.shape_cast %7 : vector<1x64x256xf32> to vector<64x256xf32>
    %cst_9 = arith.constant dense<0.000000e+00> : vector<256x256xf32>
    %9 = tpu.matmul %6, %8, %cst_9 {dimension_numbers = #tpu.dot_dimension_numbers<[1], [0], [0], [1], [0, 0, 1, 1], [], []>} : vector<256x64xf32>, vector<64x256xf32>, vector<256x256xf32> -> vector<256x256xf32>
    %cst_10 = arith.constant dense<0xFF800000> : vector<256xf32>
    %10 = vector.multi_reduction <maximumf>, %9, %cst_10 [1] : vector<256x256xf32> to vector<256xf32>
    %11 = vector.shape_cast %10 : vector<256xf32> to vector<256x1xf32>
    %12 = vector.broadcast %11 : vector<256x1xf32> to vector<256x256xf32>
    %13 = arith.subf %9, %12 : vector<256x256xf32>
    %14 = math.exp %13 : vector<256x256xf32>
    %cst_11 = arith.constant dense<0.000000e+00> : vector<256xf32>
    %15 = vector.multi_reduction <add>, %14, %cst_11 [1] : vector<256x256xf32> to vector<256xf32>
    %16 = vector.shape_cast %15 : vector<256xf32> to vector<256x1xf32>
    %17 = tpu.reciprocal %16 : vector<256x1xf32> -> vector<256x1xf32>
    %18 = vector.broadcast %17 : vector<256x1xf32> to vector<256x256xf32>
    %19 = arith.mulf %14, %18 : vector<256x256xf32>
    %c0_12 = arith.constant 0 : index
    %c0_13 = arith.constant 0 : index
    %c0_14 = arith.constant 0 : index
    %20 = vector.load %arg6[%c0_12, %c0_13, %c0_14] : memref<1x256x256xf32, #tpu.memory_space<vmem>>, vector<1x256x256xf32>
    %21 = vector.shape_cast %20 : vector<1x256x256xf32> to vector<256x256xf32>
    %22 = vector.shape_cast %19 : vector<256x256xf32> to vector<1x256x256xf32>
    tpu.vector_store %arg6[%c0_12, %c0_13, %c0_14], %22 {strides = array<i32>} : memref<1x256x256xf32, #tpu.memory_space<vmem>>, vector<1x256x256xf32>,
    return
  }
  func.func @transform_0(%arg0: i32, %arg1: i32) -> (i32, i32, i32) {
    %c0_i32 = arith.constant 0 : i32
    %c0_i32_0 = arith.constant 0 : i32
    return %arg0, %arg1, %c0_i32 : i32, i32, i32
  }
  func.func @transform_1(%arg0: i32, %arg1: i32) -> (i32, i32, i32) {
    %c0_i32 = arith.constant 0 : i32
    %c0_i32_0 = arith.constant 0 : i32
    %c0_i32_1 = arith.constant 0 : i32
    return %arg0, %c0_i32, %c0_i32_0 : i32, i32, i32
  }
  func.func @transform_2(%arg0: i32, %arg1: i32) -> (i32, i32) {
    %c0_i32 = arith.constant 0 : i32
    %c0_i32_0 = arith.constant 0 : i32
    %c0_i32_1 = arith.constant 0 : i32
    return %c0_i32, %c0_i32_0 : i32, i32
  }
  func.func @transform_3(%arg0: i32, %arg1: i32) -> (i32, i32) {
    %c0_i32 = arith.constant 0 : i32
    %c0_i32_0 = arith.constant 0 : i32
    %c0_i32_1 = arith.constant 0 : i32
    return %c0_i32, %c0_i32_0 : i32, i32
  }
  func.func @transform_4(%arg0: i32, %arg1: i32) -> (i32, i32, i32) {
    %c0_i32 = arith.constant 0 : i32
    %c0_i32_0 = arith.constant 0 : i32
    return %arg0, %arg1, %c0_i32 : i32, i32, i32
  }
}

</mosaic_0001>

<bundles_post_ra>
// kernel: qk_pam_pallas.1
= control target key start
LH: loop header
LB: loop body
LE: loop exit
PB: predicated region body
PF: predicated region fallthrough
CT: control target
= control target key end

     0   :  { %9 = vsyncpa [#allocation3], 0  ;;  %s3106_s0 = inlined_call_operand.vmem [shape: f32[2,256,64], index: 0, kind: input, shape index: {}]   ;;  %s3107_s1 = inlined_call_operand.vmem [shape: f32[2,64,256], index: 1, kind: input, shape index: {}]   ;;  %s3108_s2 = inlined_call_operand.vmem [shape: f32[64,64], index: 2, kind: input, shape index: {}]   ;;  %s3109_s3 = inlined_call_operand.vmem [shape: f32[1,64], index: 3, kind: input, shape index: {}]   ;;  %s3110_s4 = inlined_call_operand.hbm [shape: f32[2,256,256], index: 4, kind: output, shape index: {}]  }
   0x1   :  { %11 = vsyncpa [#allocation3 + $0x1], 0  ;;  %s2197_s15 = smov 0   ;;  %s2199_s16 = smov 0  }
   0x2   :  { %s2201_s17 = smov 0   ;;  %s2203_s18 = smov 0  }
   0x3   :  { %s2205_s19 = smov 0   ;;  %s2207_s20 = smov 0  }
   0x4 LB: > { %s1637_s21 = sadd.s32 4294967295, %s2166_s20   ;;  %s1638_s22 = sadd.s32 4294967294, %s2166_s20   ;;  %s2166_s20 = sphi %s2207_s20, %s17_s20   ;;  %s2162_s19 = sphi %s2205_s19, %s3183_s19   ;;  %s2158_s18 = sphi %s2203_s18, %s3182_s18   ;;  %s2154_s17 = sphi %s2201_s17, %s3181_s17   ;;  %s2150_s16 = sphi %s2199_s16, %s3180_s16   ;;  %s2146_s15 = sphi %s2197_s15, %s3179_s15  }
   0x5   : > { %s29_s23 = sadd.s32 1, %s2162_s19  ;;  %s134_s24 = sadd.s32 1, %s2154_s17 }
   0x6   : > { %p31_p0 = scmp.ge.s32.totalorder %s29_s23, 2  ;;  %p144_p1 = scmp.ne.s32.totalorder %s2154_s17, %s2150_s16 }
   0x7   : > { %p145_p2 = scmp.eq.s32.totalorder %s1637_s21, 1  ;;  %p150_p3 = scmp.ne.s32.totalorder %s2150_s16, %s2146_s15 }
   0x8   : > { %s3185_s23 = smov (%p31_p0, %s29_s23), 0  ;;  %p151_p5 = scmp.eq.s32.totalorder %s1638_s22, 1 }
   0x9   : > { %p2237_p4 = por %p145_p2, %p144_p1  ;;  %s129_s26 = ssub.s32 %s2162_s19, %s3185_s23 }
   0xa   : > { %p1641_p6 = scmp.ge.s32.totalorder %s2166_s20, 1  ;;  %p132_p7 = scmp.eq.s32.totalorder %s129_s26, 0 }
   0xb   : > { %p2244_p8 = por %p151_p5, %p150_p3  ;;  %p196_p9 = scmp.lt.s32.totalorder %s2166_s20, 3 }
   0xc   : > { %s2250_s28 = scalar_select %p132_p7, %s2154_s17, %s134_s24  }
   0xd   : > { %p197_p10 = pnand %p1641_p6, %p196_p9 }
   0xf   : > { %200 = sbr.rel (%p197_p10) target bundleno = 866 (0x362), region = 36 }
  0x14   : > { %v286_v0 = vld [vmem:[%s3108_s2 + $0x38] sm:$0xff]  ;;  %v285_v1 = vld [vmem:[%s3108_s2 + $0x30] sm:$0xff]  ;;  %p232_p11 = scmp.lt.s32.totalorder %s2158_s18, 1  ;;  %v284_v2 = vld [vmem:[%s3108_s2 + $0x28] sm:$0xff]  ;;  %vm294_vm0 = vcmask 523264   ;;  %v2168_v56 = vmov 0.0  }
  0x15   : > { %1760 = vmatprep.subr.mxu0 %v286_v0  ;;  %v283_v3 = vld [vmem:[%s3108_s2 + $0x20] sm:$0xff]  ;;  %v282_v4 = vld [vmem:[%s3108_s2 + $0x18] sm:$0xff]  ;;  %v281_v6 = vld [vmem:[%s3108_s2 + $0x10] sm:$0xff]  ;;  %840 = vmatprep.mubr.f32.mxu1 %v2168_v56  ;;  %s228_s14 = sand.u32 1, %s2150_s16   ;;  %s1719_s24 = sshll.u32 %s2158_s18, 13 }
  0x16   : > { %1761 = vmatpush3.msra.mxu0 %v286_v0  ;;  %s233_s9 = scalar_select %p232_p11, %s2158_s18, 1  ;;  %v280_v7 = vld [vmem:[%s3108_s2 + $0x8] sm:$0xff]  ;;  %v279_v8 = vld [vmem:[%s3108_s2] sm:$0xff] }
  0x17   : > { %1762 = vmatprep.subr.mxu0 %v285_v1  ;;  %v2373_v58 = vld [vmem:[%s3109_s3] ss:$0 sm:$0xff]  ;;  %s3051_s5 = scalar_lea.hbm %s3110_s4, %s1719_s24  ;;  %s3061_s18 = scalar_lea.sflag [#allocation3], %s228_s14 }
  0x18   : > { %1763 = vmatpush3.msra.mxu0 %v285_v1  ;;  %s1717_s12 = sshll.u32 %s233_s9, 8  ;;  %s1718_s6 = sshll.u32 %s233_s9, 7 }
  0x19   : > { %1764 = vmatprep.subr.mxu0 %v284_v2  ;;  %s2269_s21 = scalar_lea.vmem %s3106_s0, %s1717_s12  ;;  %s2288_s12 = scalar_lea.vmem %s3107_s1, %s1718_s6 }
  0x1a   : > { %1765 = vmatpush3.msra.mxu0 %v284_v2  ;;  %v247_v5 = vld [vmem:[%s2269_s21] sm:$0xff]  ;;  %v248_v9 = vld [vmem:[%s2269_s21 + $0x8] sm:$0xff]  ;;  %v249_v10 = vld [vmem:[%s2269_s21 + $0x10] sm:$0xff]  ;;  %s2169_s7 = smov [#allocation2]  }
  0x1b   : > { %1766 = vmatprep.subr.mxu0 %v283_v3  ;;  %1776 = vmatprep.mubr.msk.f32.mxu0 %vm294_vm0, %v247_v5  ;;  %v631_v11 = vld [vmem:[%s2288_s12 + $0x78] sm:$0xff]  ;;  %v630_v12 = vld [vmem:[%s2288_s12 + $0x70] sm:$0xff]  ;;  %v629_v13 = vld [vmem:[%s2288_s12 + $0x68] sm:$0xff]  ;;  %s2094_s8 = sshll.u32 %s2169_s7, 4  ;;  %s2095_s8 = int_to_ptr.vmem [resolvable:$false] %s2094_s8 }
  0x1c   : > { %1767 = vmatpush3.msra.mxu0 %v283_v3  ;;  %v628_v14 = vld [vmem:[%s2288_s12 + $0x60] sm:$0xff]  ;;  %v250_v15 = vld [vmem:[%s2269_s21 + $0x18] sm:$0xff]  ;;  %v626_v18 = vld [vmem:[%s2288_s12 + $0x50] sm:$0xff]  ;;  %1824 = vmatprep.subr.mxu1 %v631_v11  ;;  %s2096_s10 = scalar_lea.vmem %s2095_s8, 16384 }
  0x1d   : > { %1768 = vmatprep.subr.mxu0 %v282_v4  ;;  %v627_v16 = vld [vmem:[%s2288_s12 + $0x58] sm:$0xff]  ;;  %v251_v17 = vld [vmem:[%s2269_s21 + $0x20] sm:$0xff]  ;;  %v625_v19 = vld [vmem:[%s2288_s12 + $0x48] sm:$0xff]  ;;  %1832 = vmatpush1.msra.mxu1 %v630_v12 }
  0x1e   : > { %1769 = vmatpush3.msra.mxu0 %v282_v4  ;;  %v624_v20 = vld [vmem:[%s2288_s12 + $0x40] sm:$0xff]  ;;  %v252_v21 = vld [vmem:[%s2269_s21 + $0x28] sm:$0xff]  ;;  %v623_v22 = vld [vmem:[%s2288_s12 + $0x38] sm:$0xff]  ;;  %1825 = vmatprep.subr.mxu1 %v629_v13 }
  0x1f   : > { %1770 = vmatprep.subr.mxu0 %v281_v6  ;;  %v253_v23 = vld [vmem:[%s2269_s21 + $0x30] sm:$0xff]  ;;  %v621_v25 = vld [vmem:[%s2288_s12 + $0x28] sm:$0xff]  ;;  %1833 = vmatpush1.msra.mxu1 %v628_v14  ;;  %v254_v26 = vld [vmem:[%s2269_s21 + $0x38] sm:$0xff] }
  0x20   : > { %1771 = vmatpush3.msra.mxu0 %v281_v6  ;;  %v622_v24 = vld [vmem:[%s2288_s12 + $0x30] sm:$0xff]  ;;  %v255_v27 = vld [vmem:[%s2269_s21 + $0x40] sm:$0xff]  ;;  %1826 = vmatprep.subr.mxu1 %v627_v16  ;;  %v256_v28 = vld [vmem:[%s2269_s21 + $0x48] sm:$0xff] }
  0x21   : > { %1772 = vmatprep.subr.mxu0 %v280_v7  ;;  %1834 = vmatpush1.msra.mxu1 %v626_v18  ;;  %v257_v29 = vld [vmem:[%s2269_s21 + $0x50] sm:$0xff]  ;;  %v258_v30 = vld [vmem:[%s2269_s21 + $0x58] sm:$0xff]  ;;  %v259_v31 = vld [vmem:[%s2269_s21 + $0x60] sm:$0xff] }
  0x22   : > { %1773 = vmatpush3.msra.mxu0 %v280_v7  ;;  %1827 = vmatprep.subr.mxu1 %v625_v19  ;;  %v260_v32 = vld [vmem:[%s2269_s21 + $0x68] sm:$0xff]  ;;  %v261_v33 = vld [vmem:[%s2269_s21 + $0x70] sm:$0xff]  ;;  %v262_v34 = vld [vmem:[%s2269_s21 + $0x78] sm:$0xff] }
  0x23   : > { %1774 = vmatprep.subr.mxu0 %v279_v8  ;;  %1835 = vmatpush1.msra.mxu1 %v624_v20  ;;  %v263_v35 = vld [vmem:[%s2269_s21 + $0x80] sm:$0xff]  ;;  %v264_v36 = vld [vmem:[%s2269_s21 + $0x88] sm:$0xff]  ;;  %v265_v37 = vld [vmem:[%s2269_s21 + $0x90] sm:$0xff] }
  0x24   : > { %1775 = vmatpush3.msra.mxu0 %v279_v8  ;;  %1828 = vmatprep.subr.mxu1 %v623_v22  ;;  %v266_v38 = vld [vmem:[%s2269_s21 + $0x98] sm:$0xff]  ;;  %v267_v39 = vld [vmem:[%s2269_s21 + $0xa0] sm:$0xff]  ;;  %v268_v40 = vld [vmem:[%s2269_s21 + $0xa8] sm:$0xff] }
  0x25   : > { %1777 = vmatmul.mubr.msk.f32.vlgmr.msra.gmra.mxu0 %vm294_vm0, %v248_v9  ;;  %744 = vmatprep.subr.mxu0 %v631_v11  ;;  %v269_v41 = vld [vmem:[%s2269_s21 + $0xb0] sm:$0xff]  ;;  %v270_v42 = vld [vmem:[%s2269_s21 + $0xb8] sm:$0xff]  ;;  %v271_v43 = vld [vmem:[%s2269_s21 + $0xc0] sm:$0xff] }
  0x26   : > { %1779 = vmatprep.mubr.msk.f32.mxu0 %vm294_vm0, %v249_v10  ;;  %745 = vmatpush1.msra.mxu0 %v630_v12  ;;  %v272_v44 = vld [vmem:[%s2269_s21 + $0xc8] sm:$0xff]  ;;  %v273_v45 = vld [vmem:[%s2269_s21 + $0xd0] sm:$0xff]  ;;  %v274_v46 = vld [vmem:[%s2269_s21 + $0xd8] sm:$0xff] }
  0x27   : > { %746 = vmatprep.subr.mxu0 %v629_v13  ;;  %1836 = vmatpush1.msra.mxu1 %v622_v24  ;;  %v275_v47 = vld [vmem:[%s2269_s21 + $0xe0] sm:$0xff]  ;;  %v276_v48 = vld [vmem:[%s2269_s21 + $0xe8] sm:$0xff]  ;;  %v277_v49 = vld [vmem:[%s2269_s21 + $0xf0] sm:$0xff] }
  0x28   : > { %747 = vmatpush1.msra.mxu0 %v628_v14  ;;  %1829 = vmatprep.subr.mxu1 %v621_v25  ;;  %v278_v50 = vld [vmem:[%s2269_s21 + $0xf8] sm:$0xff]  ;;  %v620_v51 = vld [vmem:[%s2288_s12 + $0x20] sm:$0xff]  ;;  %v618_v53 = vld [vmem:[%s2288_s12 + $0x10] sm:$0xff]  ;;  %s1642_s21 = sshll.u32 %s228_s14, 9 }
  0x29   : > { %1780 = vmatmul.mubr.msk.f32.gmra.mxu0 %vm294_vm0, %v250_v15  ;;  %748 = vmatprep.subr.mxu0 %v627_v16  ;;  %v619_v52 = vld [vmem:[%s2288_s12 + $0x18] sm:$0xff]  ;;  %v617_v54 = vld [vmem:[%s2288_s12 + $0x8] sm:$0xff]  ;;  %v616_v55 = vld [vmem:[%s2288_s12] sm:$0xff]  ;;  %s2922_s22 = scalar_lea.vmem [#allocation2], %s1642_s21 }
  0x2a   : > { %1782 = vmatprep.mubr.msk.f32.mxu0 %vm294_vm0, %v251_v17  ;;  %749 = vmatpush1.msra.mxu0 %v626_v18  ;;  %s1546_s26 = sshll.u32 %s2922_s22, 4  ;;  %s3053_s26 = int_to_ptr.vmem [resolvable:$true] %s1546_s26 }
  0x2b   : > { %750 = vmatprep.subr.mxu0 %v625_v19  ;;  %1837 = vmatpush1.msra.mxu1 %v620_v51  ;;  %s2090_s6 = scalar_lea.vmem %s3053_s26, 8192  ;;  %p2097_p1 = scmp.lt.s32.totalorder %s3053_s26, %s2095_s8 }
  0x2c   : > { %751 = vmatpush1.msra.mxu0 %v624_v20  ;;  %1830 = vmatprep.subr.mxu1 %v619_v52  ;;  %p2091_p12 = scmp.ne.s32.totalorder %s3053_s26, %s2090_s6  ;;  %p2098_p2 = scmp.lt.s32.totalorder %s2096_s10, %s2090_s6 }
  0x2d   : > { %1783 = vmatmul.mubr.msk.f32.gmra.mxu0 %vm294_vm0, %v252_v21  ;;  %752 = vmatprep.subr.mxu0 %v623_v22 }
  0x2e   : > { %1785 = vmatprep.mubr.msk.f32.mxu0 %vm294_vm0, %v253_v23  ;;  %753 = vmatpush1.msra.mxu0 %v622_v24  ;;  %p2092_p13 = pnand %p2091_p12, %p2237_p4  ;;  %p2099_p3 = por %p2098_p2, %p2097_p1 }
  0x2f   : > { %754 = vmatprep.subr.mxu0 %v621_v25  ;;  %1838 = vmatpush1.msra.mxu1 %v618_v53 }
  0x30   : > { %755 = vmatpush1.msra.mxu0 %v620_v51  ;;  %1831 = vmatprep.subr.mxu1 %v617_v54  ;;  %p2093_p0 = pneg %p2092_p13 }
  0x31   : > { %1786 = vmatmul.mubr.msk.f32.gmra.mxu0 %vm294_vm0, %v254_v26  ;;  %756 = vmatprep.subr.mxu0 %v619_v52 }
  0x32   : > { %1788 = vmatprep.mubr.msk.f32.mxu0 %vm294_vm0, %v255_v27  ;;  %757 = vmatpush1.msra.mxu0 %v618_v53  ;;  %p2100_p5 = pnand %p2099_p3, %p2093_p0 }
  0x33   : > { %758 = vmatprep.subr.mxu0 %v617_v54  ;;  %1839 = vmatpush1.msra.mxu1 %v616_v55 }
  0x34   : > { %759 = vmatpush1.msra.mxu0 %v616_v55 }
  0x35   : > { %1789 = vmatmul.mubr.msk.f32.gmra.mxu0 %vm294_vm0, %v256_v28 }
  0x36   : > { %1791 = vmatprep.mubr.msk.f32.mxu0 %vm294_vm0, %v257_v29 }
  0x39   : > { %1792 = vmatmul.mubr.msk.f32.gmra.mxu0 %vm294_vm0, %v258_v30 }
  0x3a   : > { %1794 = vmatprep.mubr.msk.f32.mxu0 %vm294_vm0, %v259_v31 }
  0x3d   : > { %1795 = vmatmul.mubr.msk.f32.gmra.mxu0 %vm294_vm0, %v260_v32 }
  0x3e   : > { %1797 = vmatprep.mubr.msk.f32.mxu0 %vm294_vm0, %v261_v33 }
  0x41   : > { %1798 = vmatmul.mubr.msk.f32.gmra.mxu0 %vm294_vm0, %v262_v34 }
  0x42   : > { %1800 = vmatprep.mubr.msk.f32.mxu0 %vm294_vm0, %v263_v35 }
  0x45   : > { %1801 = vmatmul.mubr.msk.f32.gmra.mxu0 %vm294_vm0, %v264_v36 }
  0x46   : > { %1803 = vmatprep.mubr.msk.f32.mxu0 %vm294_vm0, %v265_v37 }
  0x49   : > { %1804 = vmatmul.mubr.msk.f32.gmra.mxu0 %vm294_vm0, %v266_v38 }
  0x4a   : > { %1806 = vmatprep.mubr.msk.f32.mxu0 %vm294_vm0, %v267_v39 }
  0x4d   : > { %1807 = vmatmul.mubr.msk.f32.gmra.mxu0 %vm294_vm0, %v268_v40 }
  0x4e   : > { %1809 = vmatprep.mubr.msk.f32.mxu0 %vm294_vm0, %v269_v41 }
  0x51   : > { %1810 = vmatmul.mubr.msk.f32.gmra.mxu0 %vm294_vm0, %v270_v42 }
  0x52   : > { %1812 = vmatprep.mubr.msk.f32.mxu0 %vm294_vm0, %v271_v43 }
  0x55   : > { %1813 = vmatmul.mubr.msk.f32.gmra.mxu0 %vm294_vm0, %v272_v44 }
  0x56   : > { %1815 = vmatprep.mubr.msk.f32.mxu0 %vm294_vm0, %v273_v45 }
  0x59   : > { %1816 = vmatmul.mubr.msk.f32.gmra.mxu0 %vm294_vm0, %v274_v46 }
  0x5a   : > { %1818 = vmatprep.mubr.msk.f32.mxu0 %vm294_vm0, %v275_v47 }
  0x5d   : > { %1819 = vmatmul.mubr.msk.f32.gmra.mxu0 %vm294_vm0, %v276_v48 }
  0x5e   : > { %1821 = vmatprep.mubr.msk.f32.mxu0 %vm294_vm0, %v277_v49 }
  0x61   : > { %1822 = vmatmul.mubr.msk.f32.gmra.mxu0 %vm294_vm0, %v278_v50 }
  0x62   : > { %792 = vmatprep.mubr.f32.mxu0 %v2168_v56 }
  0xe5   : > { %v1778_v57 = vpop.f32.mrf.mxu0 }
  0xe6   : > { %v463_v63 = vadd.f32 %v1778_v57, %v2373_v58 }
  0xe7   : > { %v457_v59 = vpop.f32.mrf.mxu0 }
  0xe8   : > { %v458_v60 = vadd.f32 %v2373_v58, %v457_v59 }
  0xe9   : > { %v1781_v61 = vpop.f32.mrf.mxu0 }
  0xea   : > { %1680 = vmatmul.mubr.msk.f32.vlgmr.msra.gmra.mxu0 %vm294_vm0, %v458_v60  ;;  %v473_v5 = vadd.f32 %v1781_v61, %v2373_v58 }
  0xeb   : > { %v467_v62 = vpop.f32.mrf.mxu0  ;;  %798 = vmatprep.mubr.f32.mxu0 %v2168_v56 }
  0xec   : > { %v468_v2 = vadd.f32 %v2373_v58, %v467_v62 }
  0xed   : > { %v1784_v0 = vpop.f32.mrf.mxu0 }
  0xee   : > { %1681 = vmatmul.mubr.msk.f32.gmra.mxu0 %vm294_vm0, %v463_v63  ;;  %v483_v11 = vadd.f32 %v1784_v0, %v2373_v58 }
  0xef   : > { %v477_v1 = vpop.f32.mrf.mxu0  ;;  %804 = vmatprep.mubr.f32.mxu0 %v2168_v56 }
  0xf0   : > { %v478_v8 = vadd.f32 %v2373_v58, %v477_v1 }
  0xf1   : > { %v1787_v3 = vpop.f32.mrf.mxu0 }
  0xf2   : > { %1682 = vmatmul.mubr.msk.f32.gmra.mxu0 %vm294_vm0, %v468_v2  ;;  %v493_v17 = vadd.f32 %v1787_v3, %v2373_v58 }
  0xf3   : > { %v487_v4 = vpop.f32.mrf.mxu0  ;;  %810 = vmatprep.mubr.f32.mxu0 %v2168_v56 }
  0xf4   : > { %v488_v14 = vadd.f32 %v2373_v58, %v487_v4 }
  0xf5   : > { %v1790_v6 = vpop.f32.mrf.mxu0 }
  0xf6   : > { %1683 = vmatmul.mubr.msk.f32.gmra.mxu0 %vm294_vm0, %v473_v5  ;;  %v503_v12 = vadd.f32 %v1790_v6, %v2373_v58 }
  0xf7   : > { %v497_v7 = vpop.f32.mrf.mxu0  ;;  %816 = vmatprep.mubr.f32.mxu0 %v2168_v56 }
  0xf8   : > { %v498_v9 = vadd.f32 %v2373_v58, %v497_v7 }
  0xf9   : > { %v1793_v10 = vpop.f32.mrf.mxu0 }
  0xfa   : > { %1684 = vmatmul.mubr.msk.f32.gmra.mxu0 %vm294_vm0, %v478_v8  ;;  %1688 = vmatmul.mubr.msk.f32.vlgmr.msra.gmra.mxu1 %vm294_vm0, %v498_v9  ;;  %v513_v18 = vadd.f32 %v1793_v10, %v2373_v58 }
  0xfb   : > { %822 = vmatprep.mubr.f32.mxu0 %v2168_v56  ;;  %846 = vmatprep.mubr.f32.mxu1 %v2168_v56  ;;  %v507_v13 = vpop.f32.mrf.mxu0 }
  0xfc   : > { %v508_v15 = vadd.f32 %v2373_v58, %v507_v13 }
  0xfd   : > { %v1796_v16 = vpop.f32.mrf.mxu0 }
  0xfe   : > { %1685 = vmatmul.mubr.msk.f32.gmra.mxu0 %vm294_vm0, %v483_v11  ;;  %1689 = vmatmul.mubr.msk.f32.gmra.mxu1 %vm294_vm0, %v503_v12  ;;  %v523_v22 = vadd.f32 %v1796_v16, %v2373_v58 }
  0xff   : > { %828 = vmatprep.mubr.f32.mxu0 %v2168_v56  ;;  %852 = vmatprep.mubr.f32.mxu1 %v2168_v56  ;;  %v517_v19 = vpop.f32.mrf.mxu0 }
 0x100   : > { %v518_v20 = vadd.f32 %v2373_v58, %v517_v19 }
 0x101   : > { %v1799_v21 = vpop.f32.mrf.mxu0 }
 0x102   : > { %1686 = vmatmul.mubr.msk.f32.gmra.mxu0 %vm294_vm0, %v488_v14  ;;  %1690 = vmatmul.mubr.msk.f32.gmra.mxu1 %vm294_vm0, %v508_v15  ;;  %v533_v26 = vadd.f32 %v1799_v21, %v2373_v58 }
 0x103   : > { %834 = vmatprep.mubr.f32.mxu0 %v2168_v56  ;;  %858 = vmatprep.mubr.f32.mxu1 %v2168_v56  ;;  %v527_v23 = vpop.f32.mrf.mxu0 }
 0x104   : > { %v528_v24 = vadd.f32 %v2373_v58, %v527_v23 }
 0x105   : > { %v1802_v25 = vpop.f32.mrf.mxu0 }
 0x106   : > { %1687 = vmatmul.mubr.msk.f32.gmra.mxu0 %vm294_vm0, %v493_v17  ;;  %1691 = vmatmul.mubr.msk.f32.gmra.mxu1 %vm294_vm0, %v513_v18  ;;  %v543_v30 = vadd.f32 %v1802_v25, %v2373_v58 }
 0x107   : > { %864 = vmatprep.mubr.f32.mxu1 %v2168_v56  ;;  %v537_v27 = vpop.f32.mrf.mxu0 }
 0x108   : > { %v538_v28 = vadd.f32 %v2373_v58, %v537_v27 }
 0x109   : > { %v1805_v29 = vpop.f32.mrf.mxu0 }
 0x10a   : > { %1692 = vmatmul.mubr.msk.f32.gmra.mxu1 %vm294_vm0, %v518_v20  ;;  %v553_v34 = vadd.f32 %v1805_v29, %v2373_v58 }
 0x10b   : > { %870 = vmatprep.mubr.f32.mxu1 %v2168_v56  ;;  %v547_v31 = vpop.f32.mrf.mxu0 }
 0x10c   : > { %v548_v32 = vadd.f32 %v2373_v58, %v547_v31 }
 0x10d   : > { %v1808_v33 = vpop.f32.mrf.mxu0 }
 0x10e   : > { %1693 = vmatmul.mubr.msk.f32.gmra.mxu1 %vm294_vm0, %v523_v22  ;;  %v563_v38 = vadd.f32 %v1808_v33, %v2373_v58 }
 0x10f   : > { %876 = vmatprep.mubr.f32.mxu1 %v2168_v56  ;;  %v557_v35 = vpop.f32.mrf.mxu0 }
 0x110   : > { %v558_v36 = vadd.f32 %v2373_v58, %v557_v35 }
 0x111   : > { %v1811_v37 = vpop.f32.mrf.mxu0 }
 0x112   : > { %1694 = vmatmul.mubr.msk.f32.gmra.mxu1 %vm294_vm0, %v528_v24  ;;  %v573_v42 = vadd.f32 %v1811_v37, %v2373_v58 }
 0x113   : > { %882 = vmatprep.mubr.f32.mxu1 %v2168_v56  ;;  %v567_v39 = vpop.f32.mrf.mxu0 }
 0x114   : > { %v568_v40 = vadd.f32 %v2373_v58, %v567_v39 }
 0x115   : > { %v1814_v41 = vpop.f32.mrf.mxu0 }
 0x116   : > { %1695 = vmatmul.mubr.msk.f32.gmra.mxu1 %vm294_vm0, %v533_v26  ;;  %v583_v46 = vadd.f32 %v1814_v41, %v2373_v58 }
 0x117   : > { %888 = vmatprep.mubr.f32.mxu1 %v2168_v56  ;;  %v577_v43 = vpop.f32.mrf.mxu0 }
 0x118   : > { %v578_v44 = vadd.f32 %v2373_v58, %v577_v43 }
 0x119   : > { %v1817_v45 = vpop.f32.mrf.mxu0 }
 0x11a   : > { %1696 = vmatmul.mubr.msk.f32.gmra.mxu1 %vm294_vm0, %v538_v28  ;;  %v593_v50 = vadd.f32 %v1817_v45, %v2373_v58 }
 0x11b   : > { %894 = vmatprep.mubr.f32.mxu1 %v2168_v56  ;;  %v587_v47 = vpop.f32.mrf.mxu0 }
 0x11c   : > { %v588_v48 = vadd.f32 %v2373_v58, %v587_v47 }
 0x11d   : > { %v1820_v49 = vpop.f32.mrf.mxu0 }
 0x11e   : > { %1697 = vmatmul.mubr.msk.f32.gmra.mxu1 %vm294_vm0, %v543_v30  ;;  %v603_v54 = vadd.f32 %v1820_v49, %v2373_v58 }
 0x11f   : > { %900 = vmatprep.mubr.f32.mxu1 %v2168_v56  ;;  %v597_v51 = vpop.f32.mrf.mxu0 }
 0x120   : > { %v598_v52 = vadd.f32 %v2373_v58, %v597_v51 }
 0x121   : > { %v1823_v53 = vpop.f32.mrf.mxu0 }
 0x122   : > { %1698 = vmatmul.mubr.msk.f32.gmra.mxu1 %vm294_vm0, %v548_v32  ;;  %v613_v59 = vadd.f32 %v1823_v53, %v2373_v58 }
 0x123   : > { %906 = vmatprep.mubr.f32.mxu1 %v2168_v56  ;;  %v607_v55 = vpop.f32.mrf.mxu0 }
 0x124   : > { %v608_v57 = vadd.f32 %v2373_v58, %v607_v55 }
 0x126   : > { %1699 = vmatmul.mubr.msk.f32.gmra.mxu1 %vm294_vm0, %v553_v34 }
 0x127   : > { %912 = vmatprep.mubr.f32.mxu1 %v2168_v56 }
 0x12a   : > { %1700 = vmatmul.mubr.msk.f32.gmra.mxu1 %vm294_vm0, %v558_v36 }
 0x12b   : > { %918 = vmatprep.mubr.f32.mxu1 %v2168_v56 }
 0x12e   : > { %1701 = vmatmul.mubr.msk.f32.gmra.mxu1 %vm294_vm0, %v563_v38 }
 0x12f   : > { %924 = vmatprep.mubr.f32.mxu1 %v2168_v56 }
 0x132   : > { %1702 = vmatmul.mubr.msk.f32.gmra.mxu1 %vm294_vm0, %v568_v40 }
 0x133   : > { %930 = vmatprep.mubr.f32.mxu1 %v2168_v56 }
 0x136   : > { %1703 = vmatmul.mubr.msk.f32.gmra.mxu1 %vm294_vm0, %v573_v42 }
 0x137   : > { %936 = vmatprep.mubr.f32.mxu1 %v2168_v56 }
 0x13a   : > { %1704 = vmatmul.mubr.msk.f32.gmra.mxu1 %vm294_vm0, %v578_v44 }
 0x13b   : > { %942 = vmatprep.mubr.f32.mxu1 %v2168_v56 }
 0x13e   : > { %1705 = vmatmul.mubr.msk.f32.gmra.mxu1 %vm294_vm0, %v583_v46 }
 0x13f   : > { %948 = vmatprep.mubr.f32.mxu1 %v2168_v56 }
 0x142   : > { %1706 = vmatmul.mubr.msk.f32.gmra.mxu1 %vm294_vm0, %v588_v48 }
 0x143   : > { %954 = vmatprep.mubr.f32.mxu1 %v2168_v56 }
 0x146   : > { %1707 = vmatmul.mubr.msk.f32.gmra.mxu1 %vm294_vm0, %v593_v50 }
 0x147   : > { %960 = vmatprep.mubr.f32.mxu1 %v2168_v56 }
 0x14a   : > { %1708 = vmatmul.mubr.msk.f32.gmra.mxu1 %vm294_vm0, %v598_v52 }
 0x14b   : > { %966 = vmatprep.mubr.f32.mxu1 %v2168_v56 }
 0x14e   : > { %1709 = vmatmul.mubr.msk.f32.gmra.mxu1 %vm294_vm0, %v603_v54 }
 0x14f   : > { %972 = vmatprep.mubr.f32.mxu1 %v2168_v56 }
 0x152   : > { %1710 = vmatmul.mubr.msk.f32.gmra.mxu1 %vm294_vm0, %v608_v57 }
 0x153   : > { %978 = vmatprep.mubr.f32.mxu1 %v2168_v56 }
 0x156   : > { %1711 = vmatmul.mubr.msk.f32.gmra.mxu1 %vm294_vm0, %v613_v59 }
 0x1aa   : > { %v2469_v60 = vpop.f32.mrf.mxu0 }
 0x1ac   : > { %v2471_v61 = vpop.f32.mrf.mxu0 }
 0x1ad   : > { %v985_v62 = vmax.f32 %v2469_v60, %v2471_v61 }
 0x1ae   : > { %v2475_v63 = vpop.f32.mrf.mxu0 }
 0x1af   : > { %986 = vmax.xlane.f32.xlu0 %v985_v62 }
 0x1b0   : > { %v2477_v0 = vpop.f32.mrf.mxu0 }
 0x1b1   : > { %v988_v1 = vmax.f32 %v2475_v63, %v2477_v0 }
 0x1b2   : > { %v2481_v56 = vpop.f32.mrf.mxu0 }
 0x1b3   : > { %989 = vmax.xlane.f32.xlu0 %v988_v1 }
 0x1b4   : > { %v2483_v58 = vpop.f32.mrf.mxu0 }
 0x1b5   : > { %v991_v2 = vmax.f32 %v2481_v56, %v2483_v58 }
 0x1b6   : > { %v2487_v3 = vpop.f32.mrf.mxu0 }
 0x1b7   : > { %992 = vmax.xlane.f32.xlu1 %v991_v2 }
 0x1b8   : > { %v2489_v4 = vpop.f32.mrf.mxu0 }
 0x1b9   : > { %v994_v5 = vmax.f32 %v2487_v3, %v2489_v4 }
 0x1ba   : > { %v2493_v6 = vpop.f32.mrf.mxu0  ;;  %v2495_v7 = vpop.f32.mrf.mxu1 }
 0x1bb   : > { %995 = vmax.xlane.f32.xlu1 %v994_v5 }
 0x1bc   : > { %v2497_v8 = vpop.f32.mrf.mxu0  ;;  %v2499_v9 = vpop.f32.mrf.mxu1 }
 0x1bd   : > { %v997_v10 = vmax.f32 %v2493_v6, %v2497_v8  ;;  %v1009_v15 = vmax.f32 %v2495_v7, %v2499_v9 }
 0x1be   : > { %v2503_v11 = vpop.f32.mrf.mxu0  ;;  %v2505_v12 = vpop.f32.mrf.mxu1 }
 0x1bf   : > { %998 = vmax.xlane.f32.xlu0 %v997_v10 }
 0x1c0   : > { %v2507_v13 = vpop.f32.mrf.mxu0  ;;  %v2509_v14 = vpop.f32.mrf.mxu1 }
 0x1c1   : > { %v1000_v16 = vmax.f32 %v2503_v11, %v2507_v13  ;;  %v1012_v21 = vmax.f32 %v2505_v12, %v2509_v14 }
 0x1c2   : > { %v2515_v17 = vpop.f32.mrf.mxu0  ;;  %v2517_v18 = vpop.f32.mrf.mxu1 }
 0x1c3   : > { %1010 = vmax.xlane.f32.xlu0 %v1009_v15  ;;  %1001 = vmax.xlane.f32.xlu1 %v1000_v16 }
 0x1c4   : > { %v2519_v19 = vpop.f32.mrf.mxu0  ;;  %v2521_v20 = vpop.f32.mrf.mxu1 }
 0x1c5   : > { %v1003_v22 = vmax.f32 %v2515_v17, %v2519_v19  ;;  %v1015_v28 = vmax.f32 %v2517_v18, %v2521_v20 }
 0x1c6   : > { %v2527_v23 = vpop.f32.mrf.mxu0  ;;  %v2529_v24 = vpop.f32.mrf.mxu1 }
 0x1c7   : > { %1013 = vmax.xlane.f32.xlu1 %v1012_v21  ;;  %1004 = vmax.xlane.f32.xlu0 %v1003_v22 }
 0x1c8   : > { %v2531_v25 = vpop.f32.mrf.mxu0  ;;  %v2533_v26 = vpop.f32.mrf.mxu1 }
 0x1c9   : > { %v1006_v27 = vmax.f32 %v2527_v23, %v2531_v25  ;;  %v1018_v32 = vmax.f32 %v2529_v24, %v2533_v26 }
 0x1ca   : > { %v2539_v29 = vpop.f32.mrf.mxu1 }
 0x1cb   : > { %1016 = vmax.xlane.f32.xlu0 %v1015_v28  ;;  %1007 = vmax.xlane.f32.xlu1 %v1006_v27 }
 0x1cc   : > { %v2541_v30 = vpop.f32.mrf.mxu1 }
 0x1cd   : > { %v1021_v31 = vmax.f32 %v2539_v29, %v2541_v30 }
 0x1ce   : > { %v2547_v33 = vpop.f32.mrf.mxu1 }
 0x1cf   : > { %1022 = vmax.xlane.f32.xlu0 %v1021_v31  ;;  %1019 = vmax.xlane.f32.xlu1 %v1018_v32 }
 0x1d0   : > { %v2549_v34 = vpop.f32.mrf.mxu1 }
 0x1d1   : > { %v1024_v35 = vmax.f32 %v2547_v33, %v2549_v34 }
 0x1d2   : > { %v2553_v36 = vpop.f32.mrf.mxu1 }
 0x1d3   : > { %1025 = vmax.xlane.f32.xlu1 %v1024_v35 }
 0x1d4   : > { %v2555_v37 = vpop.f32.mrf.mxu1 }
 0x1d5   : > { %v1027_v38 = vmax.f32 %v2553_v36, %v2555_v37 }
 0x1d6   : > { %v2559_v39 = vpop.f32.mrf.mxu1 }
 0x1d7   : > { %1028 = vmax.xlane.f32.xlu0 %v1027_v38 }
 0x1d8   : > { %v2561_v40 = vpop.f32.mrf.mxu1 }
 0x1d9   : > { %v1030_v41 = vmax.f32 %v2559_v39, %v2561_v40 }
 0x1da   : > { %v2565_v42 = vpop.f32.mrf.mxu1 }
 0x1db   : > { %1031 = vmax.xlane.f32.xlu1 %v1030_v41 }
 0x1dc   : > { %v2567_v43 = vpop.f32.mrf.mxu1 }
 0x1dd   : > { %v1033_v44 = vmax.f32 %v2565_v42, %v2567_v43 }
 0x1de   : > { %v2571_v45 = vpop.f32.mrf.mxu1 }
 0x1df   : > { %1034 = vmax.xlane.f32.xlu0 %v1033_v44 }
 0x1e0   : > { %v2573_v46 = vpop.f32.mrf.mxu1 }
 0x1e1   : > { %v1036_v47 = vmax.f32 %v2571_v45, %v2573_v46 }
 0x1e2   : > { %v2577_v48 = vpop.f32.mrf.mxu1 }
 0x1e3   : > { %1037 = vmax.xlane.f32.xlu1 %v1036_v47 }
 0x1e4   : > { %v2579_v49 = vpop.f32.mrf.mxu1 }
 0x1e5   : > { %v1039_v50 = vmax.f32 %v2577_v48, %v2579_v49 }
 0x1e6   : > { %v2583_v51 = vpop.f32.mrf.mxu1 }
 0x1e7   : > { %1040 = vmax.xlane.f32.xlu0 %v1039_v50 }
 0x1e8   : > { %v2585_v52 = vpop.f32.mrf.mxu1 }
 0x1e9   : > { %v1042_v53 = vmax.f32 %v2583_v51, %v2585_v52 }
 0x1ea   : > { %v2589_v54 = vpop.f32.mrf.mxu1 }
 0x1eb   : > { %1043 = vmax.xlane.f32.xlu1 %v1042_v53 }
 0x1ec   : > { %v2591_v55 = vpop.f32.mrf.mxu1 }
 0x1ed   : > { %v1045_v57 = vmax.f32 %v2589_v54, %v2591_v55 }
 0x1ee   : > { %v2595_v59 = vpop.f32.mrf.mxu1 }
 0x1ef   : > { %1046 = vmax.xlane.f32.xlu0 %v1045_v57 }
 0x1f0   : > { %v2597_v62 = vpop.f32.mrf.mxu1 }
 0x1f1   : > { %v1048_v1 = vmax.f32 %v2595_v59, %v2597_v62 }
 0x1f2   : > { %v2601_v2 = vpop.f32.mrf.mxu1 }
 0x1f3   : > { %1049 = vmax.xlane.f32.xlu1 %v1048_v1 }
 0x1f4   : > { %v2603_v5 = vpop.f32.mrf.mxu1 }
 0x1f5   : > { %v1051_v10 = vmax.f32 %v2601_v2, %v2603_v5 }
 0x1f6   : > { %v2607_v15 = vpop.f32.mrf.mxu1 }
 0x1f7   : > { %1052 = vmax.xlane.f32.xlu0 %v1051_v10 }
 0x1f8   : > { %v2609_v16 = vpop.f32.mrf.mxu1 }
 0x1f9   : > { %v1054_v21 = vmax.f32 %v2607_v15, %v2609_v16 }
 0x1fa   : > { %v2613_v22 = vpop.f32.mrf.mxu1 }
 0x1fb   : > { %1055 = vmax.xlane.f32.xlu1 %v1054_v21 }
 0x1fc   : > { %v2615_v27 = vpop.f32.mrf.mxu1 }
 0x1fd   : > { %v1057_v28 = vmax.f32 %v2613_v22, %v2615_v27 }
 0x1fe   : > { %v2619_v31 = vpop.f32.mrf.mxu1 }
 0x1ff   : > { %3135 = vst [vmem:[#allocation5_spill] sm:$0xff] %v2619_v31  ;;  %1058 = vmax.xlane.f32.xlu0 %v1057_v28 }
 0x200   : > { %v2621_v32 = vpop.f32.mrf.mxu1 }
 0x201   : > { %3136 = vst [vmem:[#allocation6_spill] sm:$0xff] %v2621_v32  ;;  %v1060_v35 = vmax.f32 %v2619_v31, %v2621_v32 }
 0x202   : > { %v2625_v38 = vpop.f32.mrf.mxu1 }
 0x203   : > { %3137 = vst [vmem:[#allocation7_spill] sm:$0xff] %v2625_v38  ;;  %1061 = vmax.xlane.f32.xlu1 %v1060_v35 }
 0x204   : > { %v2627_v41 = vpop.f32.mrf.mxu1 }
 0x205   : > { %3138 = vst [vmem:[#allocation8_spill] sm:$0xff] %v2627_v41  ;;  %v1063_v44 = vmax.f32 %v2625_v38, %v2627_v41 }
 0x206   : > { %v2631_v47 = vpop.f32.mrf.mxu1 }
 0x207   : > { %3139 = vst [vmem:[#allocation9_spill] sm:$0xff] %v2631_v47  ;;  %1064 = vmax.xlane.f32.xlu0 %v1063_v44 }
 0x208   : > { %v2633_v50 = vpop.f32.mrf.mxu1 }
 0x209   : > { %3140 = vst [vmem:[#allocation10_spill] sm:$0xff] %v2633_v50  ;;  %v1066_v53 = vmax.f32 %v2631_v47, %v2633_v50 }
 0x20a   : > { %v2637_v57 = vpop.f32.mrf.mxu1 }
 0x20b   : > { %3141 = vst [vmem:[#allocation11_spill] sm:$0xff] %v2637_v57  ;;  %1067 = vmax.xlane.f32.xlu1 %v1066_v53 }
 0x20c   : > { %v2639_v1 = vpop.f32.mrf.mxu1 }
 0x20d   : > { %3142 = vst [vmem:[#allocation12_spill] sm:$0xff] %v2639_v1  ;;  %v1069_v10 = vmax.f32 %v2637_v57, %v2639_v1 }
 0x20e   : > { %v2643_v21 = vpop.f32.mrf.mxu1 }
 0x20f   : > { %3143 = vst [vmem:[#allocation13_spill] sm:$0xff] %v2643_v21  ;;  %1070 = vmax.xlane.f32.xlu0 %v1069_v10 }
 0x210   : > { %v2645_v28 = vpop.f32.mrf.mxu1 }
 0x211   : > { %3144 = vst [vmem:[#allocation14_spill] sm:$0xff] %v2645_v28  ;;  %v1072_v35 = vmax.f32 %v2643_v21, %v2645_v28 }
 0x212   : > { %v2649_v44 = vpop.f32.mrf.mxu1 }
 0x213   : > { %3145 = vst [vmem:[#allocation15_spill] sm:$0xff] %v2649_v44  ;;  %1073 = vmax.xlane.f32.xlu1 %v1072_v35 }
 0x214   : > { %v2651_v50 = vpop.f32.mrf.mxu1 }
 0x215   : > { %3146 = vst [vmem:[#allocation16_spill] sm:$0xff] %v2651_v50  ;;  %v1075_v53 = vmax.f32 %v2649_v44, %v2651_v50 }
 0x216   : > { %v2655_v47 = vpop.f32.mrf.mxu1 }
 0x217   : > { %1076 = vmax.xlane.f32.xlu0 %v1075_v53 }
 0x218   : > { %v2657_v1 = vpop.f32.mrf.mxu1 }
 0x219   : > { %3147 = vst [vmem:[#allocation17_spill] sm:$0xff] %v2657_v1  ;;  %v1078_v10 = vmax.f32 %v2655_v47, %v2657_v1 }
 0x21b   : > { %1079 = vmax.xlane.f32.xlu1 %v1078_v10 }
 0x238   : > { %v987_v57 = vpop.xlane.xlu0 %986 }
 0x239   : > { %v1081_v28 = vsub.f32 %v2469_v60, %v987_v57  ;;  %v1082_v21 = vsub.f32 %v2471_v61, %v987_v57 }
 0x23b   : > { %v1145_v35 = vmul.f32 1.442695, %v1081_v28  ;;  %v1147_v41 = vmul.f32 1.442695, %v1082_v21 }
 0x23c   : > { %v990_v38 = vpop.xlane.xlu0 %989 }
 0x23d   : > { %1898 = vpow2.f32 %v1145_v35  ;;  %v1083_v50 = vsub.f32 %v2475_v63, %v990_v38  ;;  %v1084_v44 = vsub.f32 %v2477_v0, %v990_v38 }
 0x23e   : > { %1900 = vpow2.f32 %v1147_v41 }
 0x23f   : > { %v1149_v53 = vmul.f32 1.442695, %v1083_v50  ;;  %v1151_v32 = vmul.f32 1.442695, %v1084_v44 }
 0x240   : > { %v993_v31 = vpop.xlane.xlu1 %992 }
 0x241   : > { %1902 = vpow2.f32 %v1149_v53  ;;  %v1085_v10 = vsub.f32 %v2481_v56, %v993_v31  ;;  %v1086_v1 = vsub.f32 %v2483_v58, %v993_v31 }
 0x242   : > { %1904 = vpow2.f32 %v1151_v32 }
 0x243   : > { %v1153_v60 = vmul.f32 1.442695, %v1085_v10  ;;  %v1155_v61 = vmul.f32 1.442695, %v1086_v1 }
 0x244   : > { %v996_v57 = vpop.xlane.xlu1 %995 }
 0x245   : > { %1906 = vpow2.f32 %v1153_v60  ;;  %v1087_v21 = vsub.f32 %v2487_v3, %v996_v57  ;;  %v1088_v63 = vsub.f32 %v2489_v4, %v996_v57 }
 0x246   : > { %1908 = vpow2.f32 %v1155_v61 }
 0x247   : > { %v1157_v0 = vmul.f32 1.442695, %v1087_v21  ;;  %v1159_v38 = vmul.f32 1.442695, %v1088_v63 }
 0x248   : > { %v999_v41 = vpop.xlane.xlu0 %998 }
 0x249   : > { %1910 = vpow2.f32 %v1157_v0  ;;  %v1089_v50 = vsub.f32 %v2493_v6, %v999_v41  ;;  %v1090_v56 = vsub.f32 %v2497_v8, %v999_v41 }
 0x24a   : > { %v2671_v28 = vpop.eup %1898  ;;  %1912 = vpow2.f32 %v1159_v38 }
 0x24b   : > { %v2673_v58 = vpop.eup %1900  ;;  %v1161_v31 = vmul.f32 1.442695, %v1089_v50  ;;  %v1163_v32 = vmul.f32 1.442695, %v1090_v56 }
 0x24c   : > { %v1011_v1 = vpop.xlane.xlu0 %1010  ;;  %v1002_v3 = vpop.xlane.xlu1 %1001  ;;  %v1273_v4 = vadd.f32 %v2673_v58, %v2671_v28 }
 0x24d   : > { %1914 = vpow2.f32 %v1161_v31  ;;  %v1097_v44 = vsub.f32 %v2495_v7, %v1011_v1  ;;  %v1098_v35 = vsub.f32 %v2499_v9, %v1011_v1  ;;  %v1091_v6 = vsub.f32 %v2503_v11, %v1002_v3 }
 0x24e   : > { %v2680_v8 = vpop.eup %1902  ;;  %1916 = vpow2.f32 %v1163_v32  ;;  %v1092_v53 = vsub.f32 %v2507_v13, %v1002_v3  ;;  %1274 = vadd.xlane.f32.xlu0 %v1273_v4 }
 0x24f   : > { %v2683_v10 = vpop.eup %1904  ;;  %v1177_v60 = vmul.f32 1.442695, %v1097_v44  ;;  %v1179_v61 = vmul.f32 1.442695, %v1098_v35  ;;  %v1165_v57 = vmul.f32 1.442695, %v1091_v6 }
 0x250   : > { %v1167_v21 = vmul.f32 1.442695, %v1092_v53  ;;  %v1014_v63 = vpop.xlane.xlu1 %1013  ;;  %v1005_v0 = vpop.xlane.xlu0 %1004  ;;  %v1276_v7 = vadd.f32 %v2683_v10, %v2680_v8 }
 0x251   : > { %1918 = vpow2.f32 %v1177_v60  ;;  %v1099_v9 = vsub.f32 %v2505_v12, %v1014_v63  ;;  %v1100_v11 = vsub.f32 %v2509_v14, %v1014_v63  ;;  %v1093_v38 = vsub.f32 %v2515_v17, %v1005_v0 }
 0x252   : > { %v2690_v13 = vpop.eup %1906  ;;  %1920 = vpow2.f32 %v1179_v61  ;;  %v1094_v41 = vsub.f32 %v2519_v19, %v1005_v0  ;;  %1277 = vadd.xlane.f32.xlu1 %v1276_v7 }
 0x253   : > { %v2693_v50 = vpop.eup %1908  ;;  %1922 = vpow2.f32 %v1165_v57  ;;  %v1181_v56 = vmul.f32 1.442695, %v1099_v9  ;;  %v1183_v31 = vmul.f32 1.442695, %v1100_v11  ;;  %v1169_v32 = vmul.f32 1.442695, %v1093_v38 }
 0x254   : > { %1924 = vpow2.f32 %v1167_v21  ;;  %v1171_v1 = vmul.f32 1.442695, %v1094_v41  ;;  %v1017_v3 = vpop.xlane.xlu0 %1016  ;;  %v1008_v12 = vpop.xlane.xlu1 %1007  ;;  %v1279_v14 = vadd.f32 %v2693_v50, %v2690_v13 }
 0x255   : > { %1926 = vpow2.f32 %v1181_v56  ;;  %v1101_v17 = vsub.f32 %v2517_v18, %v1017_v3  ;;  %v1102_v4 = vsub.f32 %v2521_v20, %v1017_v3  ;;  %v1095_v19 = vsub.f32 %v2527_v23, %v1008_v12 }
 0x256   : > { %v2700_v44 = vpop.eup %1910  ;;  %1928 = vpow2.f32 %v1183_v31  ;;  %v1096_v35 = vsub.f32 %v2531_v25, %v1008_v12  ;;  %1280 = vadd.xlane.f32.xlu0 %v1279_v14 }
 0x257   : > { %v2703_v6 = vpop.eup %1912  ;;  %1930 = vpow2.f32 %v1169_v32  ;;  %v1185_v53 = vmul.f32 1.442695, %v1101_v17  ;;  %v1187_v60 = vmul.f32 1.442695, %v1102_v4  ;;  %v1173_v61 = vmul.f32 1.442695, %v1095_v19 }
 0x258   : > { %1932 = vpow2.f32 %v1171_v1  ;;  %v1175_v57 = vmul.f32 1.442695, %v1096_v35  ;;  %v1023_v21 = vpop.xlane.xlu0 %1022  ;;  %v1020_v18 = vpop.xlane.xlu1 %1019  ;;  %v1282_v20 = vadd.f32 %v2703_v6, %v2700_v44 }
 0x259   : > { %1934 = vpow2.f32 %v1185_v53  ;;  %v1105_v23 = vsub.f32 %v2539_v29, %v1023_v21  ;;  %v1106_v63 = vsub.f32 %v2541_v30, %v1023_v21  ;;  %v1103_v25 = vsub.f32 %v2529_v24, %v1020_v18 }
 0x25a   : > { %v2710_v0 = vpop.eup %1914  ;;  %1936 = vpow2.f32 %v1187_v60  ;;  %v1104_v7 = vsub.f32 %v2533_v26, %v1020_v18  ;;  %1283 = vadd.xlane.f32.xlu1 %v1282_v20 }
 0x25b   : > { %v2713_v9 = vpop.eup %1916  ;;  %1938 = vpow2.f32 %v1173_v61  ;;  %v1193_v11 = vmul.f32 1.442695, %v1105_v23  ;;  %v1195_v38 = vmul.f32 1.442695, %v1106_v63  ;;  %v1189_v41 = vmul.f32 1.442695, %v1103_v25 }
 0x25c   : > { %1940 = vpow2.f32 %v1175_v57  ;;  %v1191_v56 = vmul.f32 1.442695, %v1104_v7  ;;  %v1026_v31 = vpop.xlane.xlu1 %1025  ;;  %v1285_v29 = vadd.f32 %v2713_v9, %v2710_v0 }
 0x25d   : > { %1942 = vpow2.f32 %v1193_v11  ;;  %v1107_v24 = vsub.f32 %v2547_v33, %v1026_v31  ;;  %v1108_v30 = vsub.f32 %v2549_v34, %v1026_v31 }
 0x25e   : > { %v2719_v32 = vpop.eup %1918  ;;  %1944 = vpow2.f32 %v1195_v38  ;;  %1286 = vadd.xlane.f32.xlu0 %v1285_v29 }
 0x25f   : > { %v2721_v26 = vpop.eup %1920  ;;  %1946 = vpow2.f32 %v1189_v41  ;;  %v1197_v1 = vmul.f32 1.442695, %v1107_v24  ;;  %v1199_v3 = vmul.f32 1.442695, %v1108_v30 }
 0x260   : > { %v2723_v12 = vpop.eup %1922  ;;  %1948 = vpow2.f32 %v1191_v56  ;;  %v1029_v14 = vpop.xlane.xlu0 %1028  ;;  %v1297_v17 = vadd.f32 %v2721_v26, %v2719_v32 }
 0x261   : > { %v2727_v4 = vpop.eup %1924  ;;  %1950 = vpow2.f32 %v1197_v1  ;;  %v1109_v33 = vsub.f32 %v2553_v36, %v1029_v14  ;;  %v1110_v34 = vsub.f32 %v2555_v37, %v1029_v14 }
 0x262   : > { %v2731_v19 = vpop.eup %1926  ;;  %1952 = vpow2.f32 %v1199_v3  ;;  %1298 = vadd.xlane.f32.xlu0 %v1297_v17  ;;  %v1288_v35 = vadd.f32 %v2727_v4, %v2723_v12 }
 0x263   : > { %v2735_v53 = vpop.eup %1928  ;;  %v1201_v60 = vmul.f32 1.442695, %v1109_v33  ;;  %v1203_v61 = vmul.f32 1.442695, %v1110_v34 }
 0x264   : > { %v2737_v57 = vpop.eup %1930  ;;  %1289 = vadd.xlane.f32.xlu1 %v1288_v35  ;;  %v1032_v21 = vpop.xlane.xlu1 %1031  ;;  %v1300_v36 = vadd.f32 %v2735_v53, %v2731_v19 }
 0x265   : > { %v2741_v18 = vpop.eup %1932  ;;  %1954 = vpow2.f32 %v1201_v60  ;;  %v1111_v37 = vsub.f32 %v2559_v39, %v1032_v21  ;;  %v1112_v20 = vsub.f32 %v2561_v40, %v1032_v21 }
 0x266   : > { %v2745_v23 = vpop.eup %1934  ;;  %1956 = vpow2.f32 %v1203_v61  ;;  %v1291_v63 = vadd.f32 %v2741_v18, %v2737_v57 }
 0x267   : > { %v2749_v25 = vpop.eup %1936  ;;  %v1205_v7 = vmul.f32 1.442695, %v1111_v37  ;;  %v1207_v11 = vmul.f32 1.442695, %v1112_v20 }
 0x268   : > { %v2751_v38 = vpop.eup %1938  ;;  %1292 = vadd.xlane.f32.xlu0 %v1291_v63  ;;  %1301 = vadd.xlane.f32.xlu1 %v1300_v36  ;;  %v1035_v41 = vpop.xlane.xlu0 %1034  ;;  %v1303_v39 = vadd.f32 %v2749_v25, %v2745_v23 }
 0x269   : > { %v2755_v56 = vpop.eup %1940  ;;  %1958 = vpow2.f32 %v1205_v7  ;;  %v1113_v40 = vsub.f32 %v2565_v42, %v1035_v41  ;;  %v1114_v31 = vsub.f32 %v2567_v43, %v1035_v41 }
 0x26a   : > { %v2759_v29 = vpop.eup %1942  ;;  %1960 = vpow2.f32 %v1207_v11  ;;  %v1294_v24 = vadd.f32 %v2755_v56, %v2751_v38 }
 0x26b   : > { %v2763_v30 = vpop.eup %1944  ;;  %v1209_v1 = vmul.f32 1.442695, %v1113_v40  ;;  %v1211_v3 = vmul.f32 1.442695, %v1114_v31 }
 0x26c   : > { %v2765_v14 = vpop.eup %1946  ;;  %1304 = vadd.xlane.f32.xlu0 %v1303_v39  ;;  %1295 = vadd.xlane.f32.xlu1 %v1294_v24  ;;  %v1038_v17 = vpop.xlane.xlu1 %1037  ;;  %v1309_v42 = vadd.f32 %v2763_v30, %v2759_v29 }
 0x26d   : > { %v2769_v33 = vpop.eup %1948  ;;  %1962 = vpow2.f32 %v1209_v1  ;;  %v1115_v43 = vsub.f32 %v2571_v45, %v1038_v17  ;;  %v1116_v34 = vsub.f32 %v2573_v46, %v1038_v17 }
 0x26e   : > { %v2773_v35 = vpop.eup %1950  ;;  %1964 = vpow2.f32 %v1211_v3  ;;  %v1306_v60 = vadd.f32 %v2769_v33, %v2765_v14 }
 0x26f   : > { %v2777_v61 = vpop.eup %1952  ;;  %v1213_v21 = vmul.f32 1.442695, %v1115_v43  ;;  %v1215_v36 = vmul.f32 1.442695, %v1116_v34 }
 0x270   : > { %1310 = vadd.xlane.f32.xlu0 %v1309_v42  ;;  %1307 = vadd.xlane.f32.xlu1 %v1306_v60  ;;  %v1041_v37 = vpop.xlane.xlu0 %1040  ;;  %v1312_v20 = vadd.f32 %v2777_v61, %v2773_v35 }
 0x271   : > { %1966 = vpow2.f32 %v1213_v21  ;;  %v1117_v45 = vsub.f32 %v2577_v48, %v1041_v37  ;;  %v1118_v46 = vsub.f32 %v2579_v49, %v1041_v37 }
 0x272   : > { %v2783_v63 = vpop.eup %1954  ;;  %1968 = vpow2.f32 %v1215_v36 }
 0x273   : > { %v2785_v7 = vpop.eup %1956  ;;  %v1217_v11 = vmul.f32 1.442695, %v1117_v45  ;;  %v1219_v41 = vmul.f32 1.442695, %v1118_v46 }
 0x274   : > { %1313 = vadd.xlane.f32.xlu1 %v1312_v20  ;;  %v1044_v39 = vpop.xlane.xlu1 %1043  ;;  %v1315_v40 = vadd.f32 %v2785_v7, %v2783_v63 }
 0x275   : > { %1970 = vpow2.f32 %v1217_v11  ;;  %v1119_v31 = vsub.f32 %v2583_v51, %v1044_v39  ;;  %v1120_v24 = vsub.f32 %v2585_v52, %v1044_v39 }
 0x276   : > { %v2791_v48 = vpop.eup %1958  ;;  %1972 = vpow2.f32 %v1219_v41  ;;  %1316 = vadd.xlane.f32.xlu0 %v1315_v40 }
 0x277   : > { %v2793_v49 = vpop.eup %1960  ;;  %v1221_v1 = vmul.f32 1.442695, %v1119_v31  ;;  %v1223_v3 = vmul.f32 1.442695, %v1120_v24 }
 0x278   : > { %v1047_v17 = vpop.xlane.xlu0 %1046  ;;  %v1318_v42 = vadd.f32 %v2793_v49, %v2791_v48 }
 0x279   : > { %1974 = vpow2.f32 %v1221_v1  ;;  %v1121_v43 = vsub.f32 %v2589_v54, %v1047_v17  ;;  %v1122_v34 = vsub.f32 %v2591_v55, %v1047_v17 }
 0x27a   : > { %v2799_v51 = vpop.eup %1962  ;;  %1976 = vpow2.f32 %v1223_v3  ;;  %1319 = vadd.xlane.f32.xlu1 %v1318_v42 }
 0x27b   : > { %v2801_v52 = vpop.eup %1964  ;;  %v1225_v60 = vmul.f32 1.442695, %v1121_v43  ;;  %v1227_v21 = vmul.f32 1.442695, %v1122_v34 }
 0x27c   : > { %v1050_v36 = vpop.xlane.xlu1 %1049  ;;  %v1321_v37 = vadd.f32 %v2801_v52, %v2799_v51 }
 0x27d   : > { %1978 = vpow2.f32 %v1225_v60  ;;  %v1123_v20 = vsub.f32 %v2595_v59, %v1050_v36  ;;  %v1124_v45 = vsub.f32 %v2597_v62, %v1050_v36 }
 0x27e   : > { %v2807_v54 = vpop.eup %1966  ;;  %1980 = vpow2.f32 %v1227_v21  ;;  %1322 = vadd.xlane.f32.xlu0 %v1321_v37 }
 0x27f   : > { %v2809_v55 = vpop.eup %1968  ;;  %v1229_v46 = vmul.f32 1.442695, %v1123_v20  ;;  %v1231_v11 = vmul.f32 1.442695, %v1124_v45 }
 0x280   : > { %v1053_v41 = vpop.xlane.xlu0 %1052  ;;  %v1324_v39 = vadd.f32 %v2809_v55, %v2807_v54 }
 0x281   : > { %1982 = vpow2.f32 %v1229_v46  ;;  %v1125_v40 = vsub.f32 %v2601_v2, %v1053_v41  ;;  %v1126_v31 = vsub.f32 %v2603_v5, %v1053_v41 }
 0x282   : > { %v2815_v59 = vpop.eup %1970  ;;  %1984 = vpow2.f32 %v1231_v11  ;;  %1325 = vadd.xlane.f32.xlu1 %v1324_v39  ;;  %v3148_v39 = vld [vmem:[#allocation5_spill] sm:$0xff] }
 0x283   : > { %v2817_v62 = vpop.eup %1972  ;;  %v1233_v24 = vmul.f32 1.442695, %v1125_v40  ;;  %v1235_v1 = vmul.f32 1.442695, %v1126_v31  ;;  %v3149_v31 = vld [vmem:[#allocation6_spill] sm:$0xff] }
 0x284   : > { %v1056_v3 = vpop.xlane.xlu1 %1055  ;;  %v1327_v17 = vadd.f32 %v2817_v62, %v2815_v59 }
 0x285   : > { %1986 = vpow2.f32 %v1233_v24  ;;  %v1127_v42 = vsub.f32 %v2607_v15, %v1056_v3  ;;  %v1128_v43 = vsub.f32 %v2609_v16, %v1056_v3 }
 0x286   : > { %v2823_v2 = vpop.eup %1974  ;;  %1988 = vpow2.f32 %v1235_v1  ;;  %1328 = vadd.xlane.f32.xlu0 %v1327_v17 }
 0x287   : > { %v2825_v5 = vpop.eup %1976  ;;  %v1237_v34 = vmul.f32 1.442695, %v1127_v42  ;;  %v1239_v60 = vmul.f32 1.442695, %v1128_v43  ;;  %v3150_v43 = vld [vmem:[#allocation7_spill] sm:$0xff] }
 0x288   : > { %v1059_v21 = vpop.xlane.xlu0 %1058  ;;  %v1330_v36 = vadd.f32 %v2825_v5, %v2823_v2 }
 0x289   : > { %1990 = vpow2.f32 %v1237_v34  ;;  %v1129_v37 = vsub.f32 %v2613_v22, %v1059_v21  ;;  %v1130_v20 = vsub.f32 %v2615_v27, %v1059_v21 }
 0x28a   : > { %v2831_v15 = vpop.eup %1978  ;;  %1992 = vpow2.f32 %v1239_v60  ;;  %1331 = vadd.xlane.f32.xlu1 %v1330_v36  ;;  %v3151_v60 = vld [vmem:[#allocation8_spill] sm:$0xff] }
 0x28b   : > { %v2833_v16 = vpop.eup %1980  ;;  %v1241_v45 = vmul.f32 1.442695, %v1129_v37  ;;  %v1243_v46 = vmul.f32 1.442695, %v1130_v20 }
 0x28c   : > { %v1062_v11 = vpop.xlane.xlu1 %1061  ;;  %v1333_v41 = vadd.f32 %v2833_v16, %v2831_v15 }
 0x28d   : > { %1994 = vpow2.f32 %v1241_v45  ;;  %v1131_v40 = vsub.f32 %v3148_v39, %v1062_v11  ;;  %v1132_v24 = vsub.f32 %v3149_v31, %v1062_v11 }
 0x28e   : > { %v2839_v22 = vpop.eup %1982  ;;  %1996 = vpow2.f32 %v1243_v46  ;;  %1334 = vadd.xlane.f32.xlu0 %v1333_v41  ;;  %v3152_v41 = vld [vmem:[#allocation9_spill] sm:$0xff] }
 0x28f   : > { %v2841_v27 = vpop.eup %1984  ;;  %v1245_v1 = vmul.f32 1.442695, %v1131_v40  ;;  %v1247_v3 = vmul.f32 1.442695, %v1132_v24  ;;  %v3153_v40 = vld [vmem:[#allocation10_spill] sm:$0xff] }
 0x290   : > { %v1065_v17 = vpop.xlane.xlu0 %1064  ;;  %v1336_v42 = vadd.f32 %v2841_v27, %v2839_v22 }
 0x291   : > { %1998 = vpow2.f32 %v1245_v1  ;;  %v1133_v34 = vsub.f32 %v3150_v43, %v1065_v17  ;;  %v1134_v21 = vsub.f32 %v3151_v60, %v1065_v17 }
 0x292   : > { %v2847_v36 = vpop.eup %1986  ;;  %2000 = vpow2.f32 %v1247_v3  ;;  %1337 = vadd.xlane.f32.xlu1 %v1336_v42 }
 0x293   : > { %v2849_v37 = vpop.eup %1988  ;;  %v1249_v20 = vmul.f32 1.442695, %v1133_v34  ;;  %v1251_v45 = vmul.f32 1.442695, %v1134_v21  ;;  %v3156_v34 = vld [vmem:[#allocation11_spill] sm:$0xff]  ;;  %v3157_v21 = vld [vmem:[#allocation12_spill] sm:$0xff] }
 0x294   : > { %v1068_v46 = vpop.xlane.xlu1 %1067  ;;  %v1339_v11 = vadd.f32 %v2849_v37, %v2847_v36 }
 0x295   : > { %2002 = vpow2.f32 %v1249_v20  ;;  %v1135_v39 = vsub.f32 %v3152_v41, %v1068_v46  ;;  %v1136_v31 = vsub.f32 %v3153_v40, %v1068_v46 }
 0x296   : > { %v2855_v24 = vpop.eup %1990  ;;  %2004 = vpow2.f32 %v1251_v45  ;;  %1340 = vadd.xlane.f32.xlu0 %v1339_v11 }
 0x297   : > { %3154 = vst [vmem:[#allocation5_spill] sm:$0xff] %v2855_v24  ;;  %v2857_v1 = vpop.eup %1992  ;;  %v1253_v3 = vmul.f32 1.442695, %v1135_v39  ;;  %v1255_v17 = vmul.f32 1.442695, %v1136_v31  ;;  %v3160_v31 = vld [vmem:[#allocation13_spill] sm:$0xff] }
 0x298   : > { %3155 = vst [vmem:[#allocation6_spill] sm:$0xff] %v2857_v1  ;;  %v1071_v42 = vpop.xlane.xlu0 %1070  ;;  %v1342_v43 = vadd.f32 %v2857_v1, %v2855_v24 }
 0x299   : > { %2006 = vpow2.f32 %v1253_v3  ;;  %v1137_v60 = vsub.f32 %v3156_v34, %v1071_v42  ;;  %v1138_v20 = vsub.f32 %v3157_v21, %v1071_v42  ;;  %v3161_v3 = vld [vmem:[#allocation14_spill] sm:$0xff] }
 0x29a   : > { %v2863_v41 = vpop.eup %1994  ;;  %2008 = vpow2.f32 %v1255_v17  ;;  %1343 = vadd.xlane.f32.xlu1 %v1342_v43 }
 0x29b   : > { %3158 = vst [vmem:[#allocation7_spill] sm:$0xff] %v2863_v41  ;;  %v2865_v46 = vpop.eup %1996  ;;  %v1257_v45 = vmul.f32 1.442695, %v1137_v60  ;;  %v1259_v11 = vmul.f32 1.442695, %v1138_v20  ;;  %v3163_v20 = vld [vmem:[#allocation15_spill] sm:$0xff] }
 0x29c   : > { %3159 = vst [vmem:[#allocation8_spill] sm:$0xff] %v2865_v46  ;;  %v1074_v40 = vpop.xlane.xlu1 %1073  ;;  %v1345_v39 = vadd.f32 %v2865_v46, %v2863_v41 }
 0x29d   : > { %2010 = vpow2.f32 %v1257_v45  ;;  %v1139_v1 = vsub.f32 %v3160_v31, %v1074_v40  ;;  %v1140_v24 = vsub.f32 %v3161_v3, %v1074_v40  ;;  %v3164_v45 = vld [vmem:[#allocation16_spill] sm:$0xff] }
 0x29e   : > { %v2871_v34 = vpop.eup %1998  ;;  %2012 = vpow2.f32 %v1259_v11  ;;  %1346 = vadd.xlane.f32.xlu0 %v1345_v39 }
 0x29f   : > { %v2873_v42 = vpop.eup %2000  ;;  %v1261_v17 = vmul.f32 1.442695, %v1139_v1  ;;  %v1263_v43 = vmul.f32 1.442695, %v1140_v24 }
 0x2a0   : > { %3162 = vst [vmem:[#allocation9_spill] sm:$0xff] %v2873_v42  ;;  %v1077_v21 = vpop.xlane.xlu0 %1076  ;;  %v1348_v60 = vadd.f32 %v2873_v42, %v2871_v34 }
 0x2a1   : > { %2014 = vpow2.f32 %v1261_v17  ;;  %v1141_v46 = vsub.f32 %v3163_v20, %v1077_v21  ;;  %v1142_v41 = vsub.f32 %v3164_v45, %v1077_v21  ;;  %v3165_v17 = vld [vmem:[#allocation17_spill] sm:$0xff] }
 0x2a2   : > { %v2879_v31 = vpop.eup %2002  ;;  %2016 = vpow2.f32 %v1263_v43  ;;  %1349 = vadd.xlane.f32.xlu1 %v1348_v60 }
 0x2a3   : > { %v2881_v40 = vpop.eup %2004  ;;  %v1265_v11 = vmul.f32 1.442695, %v1141_v46  ;;  %v1267_v39 = vmul.f32 1.442695, %v1142_v41 }
 0x2a4   : > { %v1080_v3 = vpop.xlane.xlu1 %1079  ;;  %v1351_v24 = vadd.f32 %v2881_v40, %v2879_v31 }
 0x2a5   : > { %2018 = vpow2.f32 %v1265_v11  ;;  %v1143_v1 = vsub.f32 %v2655_v47, %v1080_v3  ;;  %v1144_v42 = vsub.f32 %v3165_v17, %v1080_v3 }
 0x2a6   : > { %v2887_v20 = vpop.eup %2006  ;;  %2020 = vpow2.f32 %v1267_v39  ;;  %1352 = vadd.xlane.f32.xlu0 %v1351_v24 }
 0x2a7   : > { %v2889_v21 = vpop.eup %2008  ;;  %v1269_v43 = vmul.f32 1.442695, %v1143_v1  ;;  %v1271_v60 = vmul.f32 1.442695, %v1144_v42 }
 0x2a8   : > { %v1354_v41 = vadd.f32 %v2889_v21, %v2887_v20 }
 0x2a9   : > { %2022 = vpow2.f32 %v1269_v43 }
 0x2aa   : > { %v2893_v46 = vpop.eup %2010  ;;  %2024 = vpow2.f32 %v1271_v60  ;;  %1355 = vadd.xlane.f32.xlu1 %v1354_v41 }
 0x2ab   : > { %v2895_v45 = vpop.eup %2012 }
 0x2ac   : > { %v1357_v47 = vadd.f32 %v2895_v45, %v2893_v46 }
 0x2ae   : > { %v2899_v11 = vpop.eup %2014  ;;  %1358 = vadd.xlane.f32.xlu0 %v1357_v47 }
 0x2af   : > { %3166 = vst [vmem:[#allocation10_spill] sm:$0xff] %v2899_v11  ;;  %v2901_v39 = vpop.eup %2016 }
 0x2b0   : > { %3167 = vst [vmem:[#allocation11_spill] sm:$0xff] %v2901_v39  ;;  %v1360_v42 = vadd.f32 %v2901_v39, %v2899_v11 }
 0x2b2   : > { %v2905_v3 = vpop.eup %2018  ;;  %1361 = vadd.xlane.f32.xlu1 %v1360_v42 }
 0x2b3   : > { %3168 = vst [vmem:[#allocation12_spill] sm:$0xff] %v2905_v3  ;;  %v2907_v24 = vpop.eup %2020 }
 0x2b4   : > { %3169 = vst [vmem:[#allocation13_spill] sm:$0xff] %v2907_v24  ;;  %v1363_v1 = vadd.f32 %v2907_v24, %v2905_v3 }
 0x2b6   : > { %v2911_v17 = vpop.eup %2022  ;;  %1364 = vadd.xlane.f32.xlu0 %v1363_v1 }
 0x2b7   : > { %v2913_v43 = vpop.eup %2024 }
 0x2b8   : > { %v1366_v60 = vadd.f32 %v2913_v43, %v2911_v17 }
 0x2ba   : > { %1367 = vadd.xlane.f32.xlu1 %v1366_v60 }
 0x2d7   : > { %v1275_v41 = vpop.xlane.xlu0 %1274 }
 0x2d8   : > { %2026 = vrcp.f32 %v1275_v41 }
 0x2db   : > { %v1278_v47 = vpop.xlane.xlu1 %1277 }
 0x2dc   : > { %2028 = vrcp.f32 %v1278_v47 }
 0x2df   : > { %v1281_v42 = vpop.xlane.xlu0 %1280 }
 0x2e0   : > { %2030 = vrcp.f32 %v1281_v42 }
 0x2e3   : > { %v1284_v39 = vpop.xlane.xlu1 %1283 }
 0x2e4   : > { %2032 = vrcp.f32 %v1284_v39 }
 0x2e5   : > { %v2027_v24 = vpop.eup %2026 }
 0x2e6   : > { %v1401_v1 = vmul.f32 %v2027_v24, %v2671_v28  ;;  %v1402_v3 = vmul.f32 %v2027_v24, %v2673_v58 }
 0x2e7   : > { %v1287_v11 = vpop.xlane.xlu0 %1286 }
 0x2e8   : > { %1465 = vst [vmem:[%s2922_s22] sm:$0xff] %v1401_v1  ;;  %1466 = vst [vmem:[%s2922_s22 + $0x8] sm:$0xff] %v1402_v3  ;;  %2034 = vrcp.f32 %v1287_v11 }
 0x2e9   : > { %v2029_v60 = vpop.eup %2028 }
 0x2ea   : > { %v1403_v39 = vmul.f32 %v2029_v60, %v2680_v8  ;;  %v1404_v41 = vmul.f32 %v2029_v60, %v2683_v10 }
 0x2eb   : > { %v1299_v28 = vpop.xlane.xlu0 %1298 }
 0x2ec   : > { %1467 = vst [vmem:[%s2922_s22 + $0x10] sm:$0xff] %v1403_v39  ;;  %1468 = vst [vmem:[%s2922_s22 + $0x18] sm:$0xff] %v1404_v41  ;;  %2036 = vrcp.f32 %v1299_v28 }
 0x2ed   : > { %v2031_v58 = vpop.eup %2030  ;;  %v1290_v24 = vpop.xlane.xlu1 %1289 }
 0x2ee   : > { %v1405_v47 = vmul.f32 %v2031_v58, %v2690_v13  ;;  %v1406_v42 = vmul.f32 %v2031_v58, %v2693_v50  ;;  %2038 = vrcp.f32 %v1290_v24 }
 0x2f0   : > { %1469 = vst [vmem:[%s2922_s22 + $0x20] sm:$0xff] %v1405_v47  ;;  %1470 = vst [vmem:[%s2922_s22 + $0x28] sm:$0xff] %v1406_v42 }
 0x2f1   : > { %v2033_v11 = vpop.eup %2032  ;;  %v1293_v8 = vpop.xlane.xlu0 %1292 }
 0x2f2   : > { %v1302_v10 = vpop.xlane.xlu1 %1301  ;;  %v1407_v3 = vmul.f32 %v2033_v11, %v2700_v44  ;;  %v1408_v1 = vmul.f32 %v2033_v11, %v2703_v6  ;;  %2040 = vrcp.f32 %v1293_v8 }
 0x2f3   : > { %2042 = vrcp.f32 %v1302_v10 }
 0x2f4   : > { %1471 = vst [vmem:[%s2922_s22 + $0x30] sm:$0xff] %v1407_v3  ;;  %1472 = vst [vmem:[%s2922_s22 + $0x38] sm:$0xff] %v1408_v1 }
 0x2f5   : > { %v2035_v60 = vpop.eup %2034  ;;  %v1305_v13 = vpop.xlane.xlu0 %1304 }
 0x2f6   : > { %v1296_v50 = vpop.xlane.xlu1 %1295  ;;  %v1409_v39 = vmul.f32 %v2035_v60, %v2710_v0  ;;  %v1410_v41 = vmul.f32 %v2035_v60, %v2713_v9  ;;  %2044 = vrcp.f32 %v1305_v13 }
 0x2f7   : > { %2046 = vrcp.f32 %v1296_v50 }
 0x2f8   : > { %1473 = vst [vmem:[%s2922_s22 + $0x40] sm:$0xff] %v1409_v39  ;;  %1474 = vst [vmem:[%s2922_s22 + $0x48] sm:$0xff] %v1410_v41 }
 0x2f9   : > { %v2037_v44 = vpop.eup %2036  ;;  %v1311_v6 = vpop.xlane.xlu0 %1310 }
 0x2fa   : > { %v1308_v28 = vpop.xlane.xlu1 %1307  ;;  %v1417_v58 = vmul.f32 %v2037_v44, %v2719_v32  ;;  %v1418_v24 = vmul.f32 %v2037_v44, %v2721_v26  ;;  %2048 = vrcp.f32 %v1311_v6 }
 0x2fb   : > { %v2039_v47 = vpop.eup %2038  ;;  %2050 = vrcp.f32 %v1308_v28 }
 0x2fc   : > { %1481 = vst [vmem:[%s2922_s22 + $0x80] sm:$0xff] %v1417_v58  ;;  %1482 = vst [vmem:[%s2922_s22 + $0x88] sm:$0xff] %v1418_v24  ;;  %v1411_v0 = vmul.f32 %v2039_v47, %v2723_v12  ;;  %v1412_v9 = vmul.f32 %v2039_v47, %v2727_v4 }
 0x2fe   : > { %v1314_v42 = vpop.xlane.xlu1 %1313  ;;  %1475 = vst [vmem:[%s2922_s22 + $0x50] sm:$0xff] %v1411_v0  ;;  %1476 = vst [vmem:[%s2922_s22 + $0x58] sm:$0xff] %v1412_v9 }
 0x2ff   : > { %2052 = vrcp.f32 %v1314_v42  ;;  %v2041_v32 = vpop.eup %2040  ;;  %v1317_v11 = vpop.xlane.xlu0 %1316 }
 0x300   : > { %v2043_v26 = vpop.eup %2042  ;;  %v1413_v8 = vmul.f32 %v2041_v32, %v2737_v57  ;;  %v1414_v10 = vmul.f32 %v2041_v32, %v2741_v18  ;;  %2054 = vrcp.f32 %v1317_v11 }
 0x301   : > { %v1419_v12 = vmul.f32 %v2043_v26, %v2731_v19  ;;  %v1420_v4 = vmul.f32 %v2043_v26, %v2735_v53 }
 0x302   : > { %1477 = vst [vmem:[%s2922_s22 + $0x60] sm:$0xff] %v1413_v8  ;;  %1478 = vst [vmem:[%s2922_s22 + $0x68] sm:$0xff] %v1414_v10 }
 0x303   : > { %v2045_v3 = vpop.eup %2044  ;;  %1483 = vst [vmem:[%s2922_s22 + $0x90] sm:$0xff] %v1419_v12  ;;  %1484 = vst [vmem:[%s2922_s22 + $0x98] sm:$0xff] %v1420_v4  ;;  %v1320_v1 = vpop.xlane.xlu1 %1319 }
 0x304   : > { %v2047_v60 = vpop.eup %2046  ;;  %v1421_v57 = vmul.f32 %v2045_v3, %v2745_v23  ;;  %v1422_v18 = vmul.f32 %v2045_v3, %v2749_v25  ;;  %2056 = vrcp.f32 %v1320_v1 }
 0x305   : > { %v1415_v19 = vmul.f32 %v2047_v60, %v2751_v38  ;;  %v1416_v53 = vmul.f32 %v2047_v60, %v2755_v56 }
 0x306   : > { %1485 = vst [vmem:[%s2922_s22 + $0xa0] sm:$0xff] %v1421_v57  ;;  %1486 = vst [vmem:[%s2922_s22 + $0xa8] sm:$0xff] %v1422_v18  ;;  %v3170_v57 = vld [vmem:[#allocation5_spill] sm:$0xff]  ;;  %v3171_v18 = vld [vmem:[#allocation6_spill] sm:$0xff] }
 0x307   : > { %v2049_v13 = vpop.eup %2048  ;;  %1479 = vst [vmem:[%s2922_s22 + $0x70] sm:$0xff] %v1415_v19  ;;  %1480 = vst [vmem:[%s2922_s22 + $0x78] sm:$0xff] %v1416_v53  ;;  %v1323_v50 = vpop.xlane.xlu0 %1322 }
 0x308   : > { %v2051_v39 = vpop.eup %2050  ;;  %v1425_v23 = vmul.f32 %v2049_v13, %v2759_v29  ;;  %v1426_v25 = vmul.f32 %v2049_v13, %v2763_v30  ;;  %2058 = vrcp.f32 %v1323_v50  ;;  %v3172_v13 = vld [vmem:[#allocation7_spill] sm:$0xff]  ;;  %v3173_v50 = vld [vmem:[#allocation8_spill] sm:$0xff] }
 0x309   : > { %v1423_v38 = vmul.f32 %v2051_v39, %v2765_v14  ;;  %v1424_v56 = vmul.f32 %v2051_v39, %v2769_v33 }
 0x30a   : > { %1489 = vst [vmem:[%s2922_s22 + $0xc0] sm:$0xff] %v1425_v23  ;;  %1490 = vst [vmem:[%s2922_s22 + $0xc8] sm:$0xff] %v1426_v25 }
 0x30b   : > { %1487 = vst [vmem:[%s2922_s22 + $0xb0] sm:$0xff] %v1423_v38  ;;  %1488 = vst [vmem:[%s2922_s22 + $0xb8] sm:$0xff] %v1424_v56  ;;  %v1326_v44 = vpop.xlane.xlu1 %1325  ;;  %v3174_v56 = vld [vmem:[#allocation9_spill] sm:$0xff] }
 0x30c   : > { %v2053_v41 = vpop.eup %2052  ;;  %2060 = vrcp.f32 %v1326_v44 }
 0x30d   : > { %v1427_v6 = vmul.f32 %v2053_v41, %v2773_v35  ;;  %v1428_v29 = vmul.f32 %v2053_v41, %v2777_v61  ;;  %v2055_v30 = vpop.eup %2054 }
 0x30e   : > { %v1429_v14 = vmul.f32 %v2055_v30, %v2783_v63  ;;  %v1430_v33 = vmul.f32 %v2055_v30, %v2785_v7 }
 0x30f   : > { %1491 = vst [vmem:[%s2922_s22 + $0xd0] sm:$0xff] %v1427_v6  ;;  %1492 = vst [vmem:[%s2922_s22 + $0xd8] sm:$0xff] %v1428_v29  ;;  %v1329_v28 = vpop.xlane.xlu0 %1328 }
 0x310   : > { %1493 = vst [vmem:[%s2922_s22 + $0xe0] sm:$0xff] %v1429_v14  ;;  %1494 = vst [vmem:[%s2922_s22 + $0xe8] sm:$0xff] %v1430_v33  ;;  %2062 = vrcp.f32 %v1329_v28 }
 0x311   : > { %v2057_v58 = vpop.eup %2056 }
 0x312   : > { %v1431_v35 = vmul.f32 %v2057_v58, %v2791_v48  ;;  %v1432_v61 = vmul.f32 %v2057_v58, %v2793_v49 }
 0x313   : > { %v1332_v24 = vpop.xlane.xlu1 %1331 }
 0x314   : > { %1495 = vst [vmem:[%s2922_s22 + $0xf0] sm:$0xff] %v1431_v35  ;;  %1496 = vst [vmem:[%s2922_s22 + $0xf8] sm:$0xff] %v1432_v61  ;;  %2064 = vrcp.f32 %v1332_v24  ;;  %v3175_v24 = vld [vmem:[#allocation10_spill] sm:$0xff] }
 0x315   : > { %v2059_v63 = vpop.eup %2058 }
 0x316   : > { %v1433_v7 = vmul.f32 %v2059_v63, %v2799_v51  ;;  %v1434_v47 = vmul.f32 %v2059_v63, %v2801_v52  ;;  %v3176_v63 = vld [vmem:[#allocation11_spill] sm:$0xff] }
 0x317   : > { %v1335_v0 = vpop.xlane.xlu0 %1334 }
 0x318   : > { %1497 = vst [vmem:[%s2922_s22 + $0x100] sm:$0xff] %v1433_v7  ;;  %1498 = vst [vmem:[%s2922_s22 + $0x108] sm:$0xff] %v1434_v47  ;;  %2066 = vrcp.f32 %v1335_v0  ;;  %v3177_v47 = vld [vmem:[#allocation12_spill] sm:$0xff] }
 0x319   : > { %v2061_v48 = vpop.eup %2060 }
 0x31a   : > { %v1435_v49 = vmul.f32 %v2061_v48, %v2807_v54  ;;  %v1436_v9 = vmul.f32 %v2061_v48, %v2809_v55  ;;  %v3178_v48 = vld [vmem:[#allocation13_spill] sm:$0xff] }
 0x31b   : > { %v1338_v42 = vpop.xlane.xlu1 %1337 }
 0x31c   : > { %1499 = vst [vmem:[%s2922_s22 + $0x110] sm:$0xff] %v1435_v49  ;;  %1500 = vst [vmem:[%s2922_s22 + $0x118] sm:$0xff] %v1436_v9  ;;  %2068 = vrcp.f32 %v1338_v42 }
 0x31d   : > { %v2063_v51 = vpop.eup %2062 }
 0x31e   : > { %v1437_v52 = vmul.f32 %v2063_v51, %v2815_v59  ;;  %v1438_v32 = vmul.f32 %v2063_v51, %v2817_v62 }
 0x31f   : > { %v1341_v11 = vpop.xlane.xlu0 %1340 }
 0x320   : > { %1501 = vst [vmem:[%s2922_s22 + $0x120] sm:$0xff] %v1437_v52  ;;  %1502 = vst [vmem:[%s2922_s22 + $0x128] sm:$0xff] %v1438_v32  ;;  %2070 = vrcp.f32 %v1341_v11 }
 0x321   : > { %v2065_v54 = vpop.eup %2064 }
 0x322   : > { %v1439_v55 = vmul.f32 %v2065_v54, %v2823_v2  ;;  %v1440_v26 = vmul.f32 %v2065_v54, %v2825_v5 }
 0x323   : > { %v1344_v8 = vpop.xlane.xlu1 %1343 }
 0x324   : > { %1503 = vst [vmem:[%s2922_s22 + $0x130] sm:$0xff] %v1439_v55  ;;  %1504 = vst [vmem:[%s2922_s22 + $0x138] sm:$0xff] %v1440_v26  ;;  %2072 = vrcp.f32 %v1344_v8 }
 0x325   : > { %v2067_v59 = vpop.eup %2066 }
 0x326   : > { %v1441_v62 = vmul.f32 %v2067_v59, %v2831_v15  ;;  %v1442_v10 = vmul.f32 %v2067_v59, %v2833_v16 }
 0x327   : > { %v1347_v12 = vpop.xlane.xlu0 %1346 }
 0x328   : > { %1505 = vst [vmem:[%s2922_s22 + $0x140] sm:$0xff] %v1441_v62  ;;  %1506 = vst [vmem:[%s2922_s22 + $0x148] sm:$0xff] %v1442_v10  ;;  %2074 = vrcp.f32 %v1347_v12 }
 0x329   : > { %v2069_v2 = vpop.eup %2068 }
 0x32a   : > { %v1443_v5 = vmul.f32 %v2069_v2, %v2839_v22  ;;  %v1444_v4 = vmul.f32 %v2069_v2, %v2841_v27 }
 0x32b   : > { %v1350_v3 = vpop.xlane.xlu1 %1349 }
 0x32c   : > { %1507 = vst [vmem:[%s2922_s22 + $0x150] sm:$0xff] %v1443_v5  ;;  %1508 = vst [vmem:[%s2922_s22 + $0x158] sm:$0xff] %v1444_v4  ;;  %2076 = vrcp.f32 %v1350_v3 }
 0x32d   : > { %v2071_v15 = vpop.eup %2070 }
 0x32e   : > { %v1445_v16 = vmul.f32 %v2071_v15, %v2847_v36  ;;  %v1446_v1 = vmul.f32 %v2071_v15, %v2849_v37 }
 0x32f   : > { %v1353_v60 = vpop.xlane.xlu0 %1352 }
 0x330   : > { %1509 = vst [vmem:[%s2922_s22 + $0x160] sm:$0xff] %v1445_v16  ;;  %1510 = vst [vmem:[%s2922_s22 + $0x168] sm:$0xff] %v1446_v1  ;;  %2078 = vrcp.f32 %v1353_v60 }
 0x331   : > { %v2073_v22 = vpop.eup %2072 }
 0x332   : > { %v1447_v27 = vmul.f32 %v2073_v22, %v3170_v57  ;;  %v1448_v19 = vmul.f32 %v2073_v22, %v3171_v18 }
 0x333   : > { %v1356_v53 = vpop.xlane.xlu1 %1355 }
 0x334   : > { %1511 = vst [vmem:[%s2922_s22 + $0x170] sm:$0xff] %v1447_v27  ;;  %1512 = vst [vmem:[%s2922_s22 + $0x178] sm:$0xff] %v1448_v19  ;;  %2080 = vrcp.f32 %v1356_v53 }
 0x335   : > { %v2075_v36 = vpop.eup %2074 }
 0x336   : > { %v1449_v37 = vmul.f32 %v2075_v36, %v3172_v13  ;;  %v1450_v39 = vmul.f32 %v2075_v36, %v3173_v50 }
 0x337   : > { %v1359_v23 = vpop.xlane.xlu0 %1358 }
 0x338   : > { %1513 = vst [vmem:[%s2922_s22 + $0x180] sm:$0xff] %v1449_v37  ;;  %1514 = vst [vmem:[%s2922_s22 + $0x188] sm:$0xff] %v1450_v39  ;;  %2082 = vrcp.f32 %v1359_v23 }
 0x339   : > { %v2077_v25 = vpop.eup %2076 }
 0x33a   : > { %v1451_v38 = vmul.f32 %v2077_v25, %v2871_v34  ;;  %v1452_v41 = vmul.f32 %v2077_v25, %v3174_v56 }
 0x33b   : > { %v1362_v44 = vpop.xlane.xlu1 %1361 }
 0x33c   : > { %1515 = vst [vmem:[%s2922_s22 + $0x190] sm:$0xff] %v1451_v38  ;;  %1516 = vst [vmem:[%s2922_s22 + $0x198] sm:$0xff] %v1452_v41  ;;  %2084 = vrcp.f32 %v1362_v44 }
 0x33d   : > { %v2079_v6 = vpop.eup %2078 }
 0x33e   : > { %v1453_v29 = vmul.f32 %v2079_v6, %v2879_v31  ;;  %v1454_v30 = vmul.f32 %v2079_v6, %v2881_v40 }
 0x33f   : > { %v1365_v14 = vpop.xlane.xlu0 %1364 }
 0x340   : > { %1517 = vst [vmem:[%s2922_s22 + $0x1a0] sm:$0xff] %v1453_v29  ;;  %1518 = vst [vmem:[%s2922_s22 + $0x1a8] sm:$0xff] %v1454_v30  ;;  %2086 = vrcp.f32 %v1365_v14 }
 0x341   : > { %v2081_v34 = vpop.eup %2080 }
 0x342   : > { %v1455_v33 = vmul.f32 %v2081_v34, %v2887_v20  ;;  %v1456_v28 = vmul.f32 %v2081_v34, %v2889_v21 }
 0x343   : > { %v1368_v58 = vpop.xlane.xlu1 %1367 }
 0x344   : > { %1519 = vst [vmem:[%s2922_s22 + $0x1b0] sm:$0xff] %v1455_v33  ;;  %1520 = vst [vmem:[%s2922_s22 + $0x1b8] sm:$0xff] %v1456_v28  ;;  %2088 = vrcp.f32 %v1368_v58 }
 0x345   : > { %v2083_v31 = vpop.eup %2082 }
 0x346   : > { %v1457_v40 = vmul.f32 %v2083_v31, %v2893_v46  ;;  %v1458_v35 = vmul.f32 %v2083_v31, %v2895_v45 }
 0x348   : > { %1521 = vst [vmem:[%s2922_s22 + $0x1c0] sm:$0xff] %v1457_v40  ;;  %1522 = vst [vmem:[%s2922_s22 + $0x1c8] sm:$0xff] %v1458_v35 }
 0x349   : > { %v2085_v61 = vpop.eup %2084 }
 0x34a   : > { %v1459_v20 = vmul.f32 %v2085_v61, %v3175_v24  ;;  %v1460_v21 = vmul.f32 %v2085_v61, %v3176_v63 }
 0x34c   : > { %1523 = vst [vmem:[%s2922_s22 + $0x1d0] sm:$0xff] %v1459_v20  ;;  %1524 = vst [vmem:[%s2922_s22 + $0x1d8] sm:$0xff] %v1460_v21 }
 0x34d   : > { %v2087_v7 = vpop.eup %2086 }
 0x34e   : > { %v1461_v0 = vmul.f32 %v2087_v7, %v3177_v47  ;;  %v1462_v46 = vmul.f32 %v2087_v7, %v3178_v48 }
 0x350   : > { %1525 = vst [vmem:[%s2922_s22 + $0x1e0] sm:$0xff] %v1461_v0  ;;  %1526 = vst [vmem:[%s2922_s22 + $0x1e8] sm:$0xff] %v1462_v46 }
 0x351   : > { %v2089_v45 = vpop.eup %2088 }
 0x352   : > { %v1463_v49 = vmul.f32 %v2089_v45, %v2911_v17  ;;  %v1464_v9 = vmul.f32 %v2089_v45, %v2913_v43 }
 0x354   : > { %1527 = vst [vmem:[%s2922_s22 + $0x1f0] sm:$0xff] %v1463_v49  ;;  %1528 = vst [vmem:[%s2922_s22 + $0x1f8] sm:$0xff] %v1464_v9 }
 0x355   : > { %2103 = shalt.err (!%p2100_p5)
}
 0x356   : > { %s2104_s11 = scalar_lea.hbm %s3051_s5, 8192  ;;  %s2108_s13 = scalar_lea.hbm %s3110_s4, 16384 }
 0x357   : > { %p2105_p6 = scmp.ne.s32.totalorder %s3051_s5, %s2104_s11  ;;  %p2109_p10 = scmp.lt.s32.totalorder %s3051_s5, %s3110_s4 }
 0x358   : > { %p2110_p11 = scmp.lt.s32.totalorder %s2108_s13, %s2104_s11 }
 0x359   : > { %p2106_p7 = pnand %p2105_p6, %p2237_p4 }
 0x35a   : > { %p2111_p12 = por %p2110_p11, %p2109_p10 }
 0x35b   : > { %p2107_p9 = pneg %p2106_p7 }
 0x35d   : > { %p2112_p13 = pnand %p2111_p12, %p2107_p9 }
 0x35f   : > { %2115 = shalt.err (!%p2112_p13)
}
 0x360   : > { %s2170_s22 = smov 256   ;;  %s2171_s24 = smov 16  }
 0x361   : > { %1840 = dma.vmem_to_hbm [thread:$0]  (%p2237_p4), %s3053_s26, 8192, %s3051_s5, %s3061_s18, %s2170_s22, %s2170_s22, %s2171_s24  }
 0x362 PF: > { %p1846_p0 = scmp.ge.s32.totalorder %s2166_s20, 2  ;;  %s1561_s29 = sand.u32 1, %s2146_s15  }
 0x363   : > { %s1562_s30 = scalar_lea.sflag [#allocation3], %s1561_s29 }
 0x364   : > { %p1843_p1 = pnand %p1846_p0, %p2244_p8 }
 0x366   : > { %p1844_p2 = pneg %p1843_p1 }
 0x368   : > { %2141 = dma.done.wait (%p1844_p2), %s1562_s30, 8192  }
 0x369   : > { %2143 = vsyncadd (%p1844_p2), %s1562_s30, 4294959104  ;;  %s17_s20 = sadd.s32 1, %s2166_s20   ;;  %s3179_s15 = smov %s2150_s16 }
 0x36a   : > { %p14_p3 = scmp.ge.s32.totalorder %s17_s20, 4   ;;  %s3180_s16 = smov %s2154_s17 }
 0x36b   : > { %s3181_s17 = smov %s2250_s28  ;;  %s3182_s18 = smov %s2162_s19 }
 0x36c   : > { %s3183_s19 = smov %s3185_s23  ;;  %16 = sbr.rel (!%p14_p3) target bundleno = 4 (0x4), region = 74 }
 0x371   :  { %1567 = vsyncpa [#allocation3], 1 }
 0x372   :  { %1569 = vsyncpa [#allocation3 + $0x1], 1 }

</bundles_post_ra>
